<compile_context>
chip_gen: v6e
topology: v6e:2x2x1
jax: 0.10.0
libtpu: 0.0.40
codegen_flags: <defaults>
</compile_context>

<pallas_src>
import jax
import jax.numpy as jnp
from jax import lax
from jax.experimental import pallas as pl
from jax.experimental.pallas import tpu as pltpu

# ---------------- small synthetic FLAN-T5-style config ----------------
VOCAB = 128
D_MODEL = 128                 # lane-dense (128-lane) activations / outputs
NUM_HEADS = 4
D_KV = 32                     # inner dim = NUM_HEADS * D_KV = D_MODEL
D_FF = 256
NUM_LAYERS = 2
NUM_BUCKETS = 8               # relative_attention_num_buckets
MAX_DISTANCE = 16             # relative_attention_max_distance
EPS = 1e-6                    # T5 layer_norm_epsilon
MAX_LENGTH = 8                # small stand-in for max_length=77
BATCH = 2

HD = NUM_HEADS * D_KV         # 128
NEG_INF = -1e9


# ---------------- in-kernel helpers ----------------
def _rms(x):
    # T5LayerNorm: RMS norm, no mean subtraction, no bias, f32 variance.
    var = jnp.mean(x * x, axis=-1, keepdims=True)
    return x * lax.rsqrt(var + EPS)


def _gelu_new(x):
    # NewGELU (tanh approximation) used by flan-t5 gated-gelu act (f32, EUP tanh).
    return 0.5 * x * (1.0 + jnp.tanh(0.7978845608028654 *
                                     (x + 0.044715 * x * x * x)))


# ---------------- fused whole-encoder kernel (one token block per grid step) ----------------
def _encoder_kernel(x_ref, bias_ref, ln_attn_ref, wqkv_ref, wo_ref,
                    ln_ffn_ref, wi_ref, wo_ff_ref, final_ln_ref, o_ref):
    S = MAX_LENGTH
    x0 = x_ref[...]                               # [S, D] f32, VMEM-resident block
    bias = bias_ref[...]                          # [H, S, S] combined rel-pos + pad mask

    def layer(l, x):
        # ---- self-attention block: x + Wo(Attn(RMSNorm(x) * g)) ----
        h = (_rms(x) * ln_attn_ref[l]).astype(jnp.bfloat16)            # [S, D]
        qkv = jnp.dot(h, wqkv_ref[l],
                      preferred_element_type=jnp.float32)              # [S, 3*HD]
        qkv = qkv.astype(jnp.bfloat16)

        # Split heads with static lane slices and stack on a leading batch axis:
        # all heads go through ONE batched MXU einsum (no kh.T, no per-head dots).
        def split_heads(base):
            return jnp.stack(
                [qkv[:, base + hh * D_KV: base + (hh + 1) * D_KV]
                 for hh in range(NUM_HEADS)], axis=0)                  # [H, S, dkv]

        q3 = split_heads(0)
        k3 = split_heads(HD)
        v3 = split_heads(2 * HD)

        # T5 attention: NO 1/sqrt(d) scaling; combined additive bias added once.
        s = jnp.einsum('hqd,hkd->hqk', q3, k3,
                       preferred_element_type=jnp.float32)             # [H, S, S]
        s = s + bias
        m = jnp.max(s, axis=-1, keepdims=True)
        p = jnp.exp(s - m)
        p = p * pl.reciprocal(jnp.sum(p, axis=-1, keepdims=True), approx=True)
        o3 = jnp.einsum('hqk,hkd->hqd', p.astype(jnp.bfloat16), v3,
                        preferred_element_type=jnp.float32)            # [H, S, dkv]

        # Re-concat heads on lanes -> single K=HD output projection per layer.
        o_sd = jnp.concatenate([o3[hh] for hh in range(NUM_HEADS)], axis=-1)
        attn = jnp.dot(o_sd.astype(jnp.bfloat16), wo_ref[l],
                       preferred_element_type=jnp.float32)             # [S, D]
        x = x + attn                                                   # residual in registers

        # ---- FFN block: x + Wo_ff(gelu(h@wi0) * (h@wi1)) ----
        h = (_rms(x) * ln_ffn_ref[l]).astype(jnp.bfloat16)
        hw = jnp.dot(h, wi_ref[l],
                     preferred_element_type=jnp.float32)               # [S, 2*F]
        hg = _gelu_new(hw[:, :D_FF]) * hw[:, D_FF:]                    # f32 gate
        x = x + jnp.dot(hg.astype(jnp.bfloat16), wo_ff_ref[l],
                        preferred_element_type=jnp.float32)
        return x

    x = lax.fori_loop(0, NUM_LAYERS, layer, x0, unroll=True)

    # final RMSNorm -> last_hidden_state (dropout is identity when frozen/eval)
    o_ref[...] = _rms(x) * final_ln_ref[...]


# ---------------- glue: relative position bias (HF T5 semantics) ----------------
def relative_position_bucket(relative_position,
                             num_buckets=NUM_BUCKETS,
                             max_distance=MAX_DISTANCE):
    # bidirectional (encoder) bucketing
    num_buckets //= 2
    relative_buckets = (relative_position > 0).astype(jnp.int32) * num_buckets
    relative_position = jnp.abs(relative_position)
    max_exact = num_buckets // 2
    is_small = relative_position < max_exact
    rel_pos_f = jnp.maximum(relative_position, 1).astype(jnp.float32)
    rel_if_large = max_exact + (
        jnp.log(rel_pos_f / max_exact)
        / jnp.log(max_distance / max_exact)
        * (num_buckets - max_exact)
    ).astype(jnp.int32)
    rel_if_large = jnp.minimum(rel_if_large, num_buckets - 1)
    relative_buckets += jnp.where(is_small, relative_position, rel_if_large)
    return relative_buckets


def compute_position_bias(rel_attn_bias_table, seq_len):
    ctx = jnp.arange(seq_len)[:, None]
    mem = jnp.arange(seq_len)[None, :]
    buckets = relative_position_bucket(mem - ctx)             # [S, S]
    bias = jnp.take(rel_attn_bias_table, buckets, axis=0)     # [S, S, H]
    return jnp.transpose(bias, (2, 0, 1)).astype(jnp.float32)   # [H, S, S]


# ---------------- parameters (deterministic synthetic init) ----------------
def init_params(key):
    keys = jax.random.split(key, 3 + NUM_LAYERS)

    def norm(k, shape, scale=0.02):
        return (scale * jax.random.normal(k, shape)).astype(jnp.float32)

    wqkv, wo, wi, wo_ff = [], [], [], []
    for i in range(NUM_LAYERS):
        lk = jax.random.split(keys[3 + i], 7)
        wqkv.append(jnp.concatenate(
            [norm(lk[0], (D_MODEL, HD)),
             norm(lk[1], (D_MODEL, HD)),
             norm(lk[2], (D_MODEL, HD))], axis=-1))             # [D, 3*HD]
        wo.append(norm(lk[3], (HD, D_MODEL)))                   # [HD, D]
        wi.append(jnp.concatenate(
            [norm(lk[4], (D_MODEL, D_FF)),
             norm(lk[5], (D_MODEL, D_FF))], axis=-1))           # [D, 2*F]
        wo_ff.append(norm(lk[6], (D_FF, D_MODEL)))              # [F, D]

    return {
        "embed": norm(keys[0], (VOCAB, D_MODEL), 1.0),
        "rel_bias": norm(keys[1], (NUM_BUCKETS, NUM_HEADS)),
        "ln_attn": jnp.ones((NUM_LAYERS, 1, D_MODEL), jnp.float32),
        "ln_ffn": jnp.ones((NUM_LAYERS, 1, D_MODEL), jnp.float32),
        "final_ln": jnp.ones((1, D_MODEL), jnp.float32),
        # MXU-feeding weights stored in bf16 (halves DMA bytes / VMEM).
        "wqkv": jnp.stack(wqkv, 0).astype(jnp.bfloat16),        # [L, D, 3*HD]
        "wo": jnp.stack(wo, 0).astype(jnp.bfloat16),            # [L, HD, D]
        "wi": jnp.stack(wi, 0).astype(jnp.bfloat16),            # [L, D, 2*F]
        "wo_ff": jnp.stack(wo_ff, 0).astype(jnp.bfloat16),      # [L, F, D]
    }


# ---------------- T5 encoder forward (== FrozenFLANEmbedder.forward body) ----------------
def t5_encoder_forward(params, input_ids, attention_mask):
    B, S = input_ids.shape
    # embedding lookup (glue; gather of a [VOCAB, D] table)
    x = jnp.take(params["embed"], input_ids, axis=0)              # [B, S, D]
    x = x.reshape(B * S, D_MODEL).astype(jnp.float32)

    # relative position bias (layer 0, shared across layers) + padding mask,
    # combined ONCE outside the kernel (review: hoist bias+mask broadcast).
    pos_bias = compute_position_bias(params["rel_bias"], S)       # [H, S, S]
    mask_bias = jnp.where(attention_mask > 0, 0.0, NEG_INF).astype(jnp.float32)
    bias = (pos_bias[None, :, :, :] +
            mask_bias[:, None, None, :]).reshape(B * NUM_HEADS, S, S)

    zero3 = lambda b: (0, 0, 0)
    z = pl.pallas_call(
        _encoder_kernel,
        out_shape=jax.ShapeDtypeStruct((B * S, D_MODEL), jnp.float32),
        grid=(B,),
        in_specs=[
            pl.BlockSpec((S, D_MODEL), lambda b: (b, 0)),                 # x block
            pl.BlockSpec((NUM_HEADS, S, S), lambda b: (b, 0, 0)),         # bias block
            pl.BlockSpec((NUM_LAYERS, 1, D_MODEL), zero3),                # ln_attn
            pl.BlockSpec((NUM_LAYERS, D_MODEL, 3 * HD), zero3),           # wqkv
            pl.BlockSpec((NUM_LAYERS, HD, D_MODEL), zero3),               # wo
            pl.BlockSpec((NUM_LAYERS, 1, D_MODEL), zero3),                # ln_ffn
            pl.BlockSpec((NUM_LAYERS, D_MODEL, 2 * D_FF), zero3),         # wi
            pl.BlockSpec((NUM_LAYERS, D_FF, D_MODEL), zero3),             # wo_ff
            pl.BlockSpec((1, D_MODEL), lambda b: (0, 0)),                 # final_ln
        ],
        out_specs=pl.BlockSpec((S, D_MODEL), lambda b: (b, 0)),
        compiler_params=pltpu.CompilerParams(
            dimension_semantics=("parallel",),          # both TCs on v7x
            vmem_limit_bytes=32 * 1024 * 1024),
    )(x, bias, params["ln_attn"], params["wqkv"], params["wo"],
      params["ln_ffn"], params["wi"], params["wo_ff"], params["final_ln"])

    return z.reshape(B, S, D_MODEL)


if __name__ == "__main__":
    key = jax.random.PRNGKey(0)
    pkey, tkey = jax.random.split(key)
    params = init_params(pkey)

    # TODO(synk): T5Tokenizer (string -> ids) has no Pallas equivalent; the
    # kernel consumes pre-tokenized, padded-to-max_length ids + attention mask.
    input_ids = jax.random.randint(tkey, (BATCH, MAX_LENGTH), 1, VOCAB,
                                   dtype=jnp.int32)
    lengths = jnp.array([MAX_LENGTH, 5], dtype=jnp.int32)       # 2nd seq padded
    attention_mask = (jnp.arange(MAX_LENGTH)[None, :]
                      < lengths[:, None]).astype(jnp.int32)     # [B, S]
    input_ids = input_ids * attention_mask                      # pad id = 0

    fwd = jax.jit(t5_encoder_forward)
    z = fwd(params, input_ids, attention_mask)
    z = jax.block_until_ready(z)
    assert z.shape == (BATCH, MAX_LENGTH, D_MODEL)
    assert z.dtype == jnp.float32
    print("KERNEL_OK")
</pallas_src>

<mosaic_0001>
module attributes {stable_mosaic.version = 11 : i64} {
  func.func @_encoder_kernel(%arg0: i32, %arg1: memref<8x128xf32, #tpu.memory_space<vmem>>, %arg2: memref<4x8x8xf32, #tpu.memory_space<vmem>>, %arg3: memref<2x1x128xf32, #tpu.memory_space<vmem>>, %arg4: memref<2x128x384xbf16, #tpu.memory_space<vmem>>, %arg5: memref<2x128x128xbf16, #tpu.memory_space<vmem>>, %arg6: memref<2x1x128xf32, #tpu.memory_space<vmem>>, %arg7: memref<2x128x512xbf16, #tpu.memory_space<vmem>>, %arg8: memref<2x256x128xbf16, #tpu.memory_space<vmem>>, %arg9: memref<1x128xf32, #tpu.memory_space<vmem>>, %arg10: memref<8x128xf32, #tpu.memory_space<vmem>>) attributes {dimension_semantics = [#tpu.dimension_semantics<parallel>], iteration_bounds = array<i64: 2>, scalar_prefetch = 0 : i64, scratch_operands = 0 : i64, tpu.core_type = #tpu.core_type<tc>, window_params = [{transform_indices = @transform_0, window_bounds = array<i64: 8, 128>}, {transform_indices = @transform_1, window_bounds = array<i64: 4, 8, 8>}, {pipeline_mode = #tpu.pipeline_mode<synchronous>, transform_indices = @transform_2, window_bounds = array<i64: 2, 1, 128>}, {pipeline_mode = #tpu.pipeline_mode<synchronous>, transform_indices = @transform_3, window_bounds = array<i64: 2, 128, 384>}, {pipeline_mode = #tpu.pipeline_mode<synchronous>, transform_indices = @transform_4, window_bounds = array<i64: 2, 128, 128>}, {pipeline_mode = #tpu.pipeline_mode<synchronous>, transform_indices = @transform_5, window_bounds = array<i64: 2, 1, 128>}, {pipeline_mode = #tpu.pipeline_mode<synchronous>, transform_indices = @transform_6, window_bounds = array<i64: 2, 128, 512>}, {pipeline_mode = #tpu.pipeline_mode<synchronous>, transform_indices = @transform_7, window_bounds = array<i64: 2, 256, 128>}, {pipeline_mode = #tpu.pipeline_mode<synchronous>, transform_indices = @transform_8, window_bounds = array<i64: 1, 128>}, {transform_indices = @transform_9, window_bounds = array<i64: 8, 128>}]} {
    %c0 = arith.constant 0 : index
    %c0_0 = arith.constant 0 : index
    %0 = vector.load %arg1[%c0, %c0_0] : memref<8x128xf32, #tpu.memory_space<vmem>>, vector<8x128xf32>
    %c0_1 = arith.constant 0 : index
    %c0_2 = arith.constant 0 : index
    %c0_3 = arith.constant 0 : index
    %1 = vector.load %arg2[%c0_1, %c0_2, %c0_3] : memref<4x8x8xf32, #tpu.memory_space<vmem>>, vector<4x8x8xf32>
    %c0_i32 = arith.constant 0 : i32
    %2 = arith.mulf %0, %0 : vector<8x128xf32>
    %cst = arith.constant dense<0.000000e+00> : vector<8xf32>
    %3 = vector.multi_reduction <add>, %2, %cst [1] : vector<8x128xf32> to vector<8xf32>
    %4 = vector.shape_cast %3 : vector<8xf32> to vector<8x1xf32>
    %cst_4 = arith.constant 1.280000e+02 : f32
    %5 = vector.broadcast %cst_4 : f32 to vector<8x1xf32>
    %6 = arith.divf %4, %5 : vector<8x1xf32>
    %cst_5 = arith.constant 9.99999997E-7 : f32
    %7 = vector.broadcast %cst_5 : f32 to vector<8x1xf32>
    %8 = arith.addf %6, %7 : vector<8x1xf32>
    %9 = math.rsqrt %8 : vector<8x1xf32>
    %10 = vector.broadcast %9 : vector<8x1xf32> to vector<8x128xf32>
    %11 = arith.mulf %0, %10 : vector<8x128xf32>
    %12 = arith.index_cast %c0_i32 : i32 to index
    %c0_6 = arith.constant 0 : index
    %c0_7 = arith.constant 0 : index
    %13 = vector.load %arg3[%12, %c0_6, %c0_7] : memref<2x1x128xf32, #tpu.memory_space<vmem>>, vector<1x1x128xf32>
    %14 = vector.shape_cast %13 : vector<1x1x128xf32> to vector<1x128xf32>
    %15 = vector.broadcast %14 : vector<1x128xf32> to vector<8x128xf32>
    %16 = arith.mulf %11, %15 : vector<8x128xf32>
    %17 = arith.truncf %16 : vector<8x128xf32> to vector<8x128xbf16>
    %18 = arith.index_cast %c0_i32 : i32 to index
    %c0_8 = arith.constant 0 : index
    %c0_9 = arith.constant 0 : index
    %19 = vector.load %arg4[%18, %c0_8, %c0_9] : memref<2x128x384xbf16, #tpu.memory_space<vmem>>, vector<1x128x384xbf16>
    %20 = vector.shape_cast %19 : vector<1x128x384xbf16> to vector<128x384xbf16>
    %cst_10 = arith.constant dense<0.000000e+00> : vector<8x384xf32>
    %21 = tpu.matmul %17, %20, %cst_10 {dimension_numbers = #tpu.dot_dimension_numbers<[1], [0], [0], [1], [0, 0, 1, 1], [], []>} : vector<8x128xbf16>, vector<128x384xbf16>, vector<8x384xf32> -> vector<8x384xf32>
    %22 = arith.truncf %21 : vector<8x384xf32> to vector<8x384xbf16>
    %23 = vector.extract_strided_slice %22 {offsets = [0, 0], sizes = [8, 32], strides = [1, 1]} : vector<8x384xbf16> to vector<8x32xbf16>
    %24 = vector.extract_strided_slice %22 {offsets = [0, 32], sizes = [8, 32], strides = [1, 1]} : vector<8x384xbf16> to vector<8x32xbf16>
    %25 = vector.extract_strided_slice %22 {offsets = [0, 64], sizes = [8, 32], strides = [1, 1]} : vector<8x384xbf16> to vector<8x32xbf16>
    %26 = vector.extract_strided_slice %22 {offsets = [0, 96], sizes = [8, 32], strides = [1, 1]} : vector<8x384xbf16> to vector<8x32xbf16>
    %27 = vector.shape_cast %23 : vector<8x32xbf16> to vector<1x8x32xbf16>
    %28 = vector.shape_cast %24 : vector<8x32xbf16> to vector<1x8x32xbf16>
    %29 = vector.shape_cast %25 : vector<8x32xbf16> to vector<1x8x32xbf16>
    %30 = vector.shape_cast %26 : vector<8x32xbf16> to vector<1x8x32xbf16>
    %31 = tpu.concatenate %27, %28, %29, %30 in 0 : vector<1x8x32xbf16>, vector<1x8x32xbf16>, vector<1x8x32xbf16>, vector<1x8x32xbf16> -> vector<4x8x32xbf16>
    %32 = vector.extract_strided_slice %22 {offsets = [0, 128], sizes = [8, 32], strides = [1, 1]} : vector<8x384xbf16> to vector<8x32xbf16>
    %33 = vector.extract_strided_slice %22 {offsets = [0, 160], sizes = [8, 32], strides = [1, 1]} : vector<8x384xbf16> to vector<8x32xbf16>
    %34 = vector.extract_strided_slice %22 {offsets = [0, 192], sizes = [8, 32], strides = [1, 1]} : vector<8x384xbf16> to vector<8x32xbf16>
    %35 = vector.extract_strided_slice %22 {offsets = [0, 224], sizes = [8, 32], strides = [1, 1]} : vector<8x384xbf16> to vector<8x32xbf16>
    %36 = vector.shape_cast %32 : vector<8x32xbf16> to vector<1x8x32xbf16>
    %37 = vector.shape_cast %33 : vector<8x32xbf16> to vector<1x8x32xbf16>
    %38 = vector.shape_cast %34 : vector<8x32xbf16> to vector<1x8x32xbf16>
    %39 = vector.shape_cast %35 : vector<8x32xbf16> to vector<1x8x32xbf16>
    %40 = tpu.concatenate %36, %37, %38, %39 in 0 : vector<1x8x32xbf16>, vector<1x8x32xbf16>, vector<1x8x32xbf16>, vector<1x8x32xbf16> -> vector<4x8x32xbf16>
    %41 = vector.extract_strided_slice %22 {offsets = [0, 256], sizes = [8, 32], strides = [1, 1]} : vector<8x384xbf16> to vector<8x32xbf16>
    %42 = vector.extract_strided_slice %22 {offsets = [0, 288], sizes = [8, 32], strides = [1, 1]} : vector<8x384xbf16> to vector<8x32xbf16>
    %43 = vector.extract_strided_slice %22 {offsets = [0, 320], sizes = [8, 32], strides = [1, 1]} : vector<8x384xbf16> to vector<8x32xbf16>
    %44 = vector.extract_strided_slice %22 {offsets = [0, 352], sizes = [8, 32], strides = [1, 1]} : vector<8x384xbf16> to vector<8x32xbf16>
    %45 = vector.shape_cast %41 : vector<8x32xbf16> to vector<1x8x32xbf16>
    %46 = vector.shape_cast %42 : vector<8x32xbf16> to vector<1x8x32xbf16>
    %47 = vector.shape_cast %43 : vector<8x32xbf16> to vector<1x8x32xbf16>
    %48 = vector.shape_cast %44 : vector<8x32xbf16> to vector<1x8x32xbf16>
    %49 = tpu.concatenate %45, %46, %47, %48 in 0 : vector<1x8x32xbf16>, vector<1x8x32xbf16>, vector<1x8x32xbf16>, vector<1x8x32xbf16> -> vector<4x8x32xbf16>
    "tpu.trace_start"() <{level = 10 : i32, message = "hqd,hkd->hqk"}> : () -> ()
    %cst_11 = arith.constant dense<0.000000e+00> : vector<4x8x8xf32>
    %50 = tpu.matmul %31, %40, %cst_11 {dimension_numbers = #tpu.dot_dimension_numbers<[2], [2], [1], [1], [0, 0, 0, 1, 1, 1], [0], [0]>} : vector<4x8x32xbf16>, vector<4x8x32xbf16>, vector<4x8x8xf32> -> vector<4x8x8xf32>
    "tpu.trace_stop"() : () -> ()
    %51 = arith.addf %50, %1 : vector<4x8x8xf32>
    %cst_12 = arith.constant dense<0xFF800000> : vector<4x8xf32>
    %52 = vector.multi_reduction <maximumf>, %51, %cst_12 [2] : vector<4x8x8xf32> to vector<4x8xf32>
    %53 = vector.shape_cast %52 : vector<4x8xf32> to vector<4x8x1xf32>
    %54 = vector.broadcast %53 : vector<4x8x1xf32> to vector<4x8x8xf32>
    %55 = arith.subf %51, %54 : vector<4x8x8xf32>
    %56 = math.exp %55 : vector<4x8x8xf32>
    %cst_13 = arith.constant dense<0.000000e+00> : vector<4x8xf32>
    %57 = vector.multi_reduction <add>, %56, %cst_13 [2] : vector<4x8x8xf32> to vector<4x8xf32>
    %58 = vector.shape_cast %57 : vector<4x8xf32> to vector<4x8x1xf32>
    %59 = tpu.reciprocal %58 {approx = true} : vector<4x8x1xf32> -> vector<4x8x1xf32>
    %60 = vector.broadcast %59 : vector<4x8x1xf32> to vector<4x8x8xf32>
    %61 = arith.mulf %56, %60 : vector<4x8x8xf32>
    %62 = arith.truncf %61 : vector<4x8x8xf32> to vector<4x8x8xbf16>
    "tpu.trace_start"() <{level = 10 : i32, message = "hqk,hkd->hqd"}> : () -> ()
    %cst_14 = arith.constant dense<0.000000e+00> : vector<4x8x32xf32>
    %63 = tpu.matmul %62, %49, %cst_14 {dimension_numbers = #tpu.dot_dimension_numbers<[2], [1], [1], [2], [0, 0, 0, 1, 1, 2], [0], [0]>} : vector<4x8x8xbf16>, vector<4x8x32xbf16>, vector<4x8x32xf32> -> vector<4x8x32xf32>
    "tpu.trace_stop"() : () -> ()
    %64 = vector.extract_strided_slice %63 {offsets = [0, 0, 0], sizes = [1, 8, 32], strides = [1, 1, 1]} : vector<4x8x32xf32> to vector<1x8x32xf32>
    %65 = vector.shape_cast %64 : vector<1x8x32xf32> to vector<8x32xf32>
    %66 = vector.extract_strided_slice %63 {offsets = [1, 0, 0], sizes = [1, 8, 32], strides = [1, 1, 1]} : vector<4x8x32xf32> to vector<1x8x32xf32>
    %67 = vector.shape_cast %66 : vector<1x8x32xf32> to vector<8x32xf32>
    %68 = vector.extract_strided_slice %63 {offsets = [2, 0, 0], sizes = [1, 8, 32], strides = [1, 1, 1]} : vector<4x8x32xf32> to vector<1x8x32xf32>
    %69 = vector.shape_cast %68 : vector<1x8x32xf32> to vector<8x32xf32>
    %70 = vector.extract_strided_slice %63 {offsets = [3, 0, 0], sizes = [1, 8, 32], strides = [1, 1, 1]} : vector<4x8x32xf32> to vector<1x8x32xf32>
    %71 = vector.shape_cast %70 : vector<1x8x32xf32> to vector<8x32xf32>
    %72 = tpu.concatenate %65, %67, %69, %71 in 1 : vector<8x32xf32>, vector<8x32xf32>, vector<8x32xf32>, vector<8x32xf32> -> vector<8x128xf32>
    %73 = arith.truncf %72 : vector<8x128xf32> to vector<8x128xbf16>
    %74 = arith.index_cast %c0_i32 : i32 to index
    %c0_15 = arith.constant 0 : index
    %c0_16 = arith.constant 0 : index
    %75 = vector.load %arg5[%74, %c0_15, %c0_16] : memref<2x128x128xbf16, #tpu.memory_space<vmem>>, vector<1x128x128xbf16>
    %76 = vector.shape_cast %75 : vector<1x128x128xbf16> to vector<128x128xbf16>
    %cst_17 = arith.constant dense<0.000000e+00> : vector<8x128xf32>
    %77 = tpu.matmul %73, %76, %cst_17 {dimension_numbers = #tpu.dot_dimension_numbers<[1], [0], [0], [1], [0, 0, 1, 1], [], []>} : vector<8x128xbf16>, vector<128x128xbf16>, vector<8x128xf32> -> vector<8x128xf32>
    %78 = arith.addf %0, %77 : vector<8x128xf32>
    %79 = arith.mulf %78, %78 : vector<8x128xf32>
    %cst_18 = arith.constant dense<0.000000e+00> : vector<8xf32>
    %80 = vector.multi_reduction <add>, %79, %cst_18 [1] : vector<8x128xf32> to vector<8xf32>
    %81 = vector.shape_cast %80 : vector<8xf32> to vector<8x1xf32>
    %cst_19 = arith.constant 1.280000e+02 : f32
    %82 = vector.broadcast %cst_19 : f32 to vector<8x1xf32>
    %83 = arith.divf %81, %82 : vector<8x1xf32>
    %cst_20 = arith.constant 9.99999997E-7 : f32
    %84 = vector.broadcast %cst_20 : f32 to vector<8x1xf32>
    %85 = arith.addf %83, %84 : vector<8x1xf32>
    %86 = math.rsqrt %85 : vector<8x1xf32>
    %87 = vector.broadcast %86 : vector<8x1xf32> to vector<8x128xf32>
    %88 = arith.mulf %78, %87 : vector<8x128xf32>
    %89 = arith.index_cast %c0_i32 : i32 to index
    %c0_21 = arith.constant 0 : index
    %c0_22 = arith.constant 0 : index
    %90 = vector.load %arg6[%89, %c0_21, %c0_22] : memref<2x1x128xf32, #tpu.memory_space<vmem>>, vector<1x1x128xf32>
    %91 = vector.shape_cast %90 : vector<1x1x128xf32> to vector<1x128xf32>
    %92 = vector.broadcast %91 : vector<1x128xf32> to vector<8x128xf32>
    %93 = arith.mulf %88, %92 : vector<8x128xf32>
    %94 = arith.truncf %93 : vector<8x128xf32> to vector<8x128xbf16>
    %95 = arith.index_cast %c0_i32 : i32 to index
    %c0_23 = arith.constant 0 : index
    %c0_24 = arith.constant 0 : index
    %96 = vector.load %arg7[%95, %c0_23, %c0_24] : memref<2x128x512xbf16, #tpu.memory_space<vmem>>, vector<1x128x512xbf16>
    %97 = vector.shape_cast %96 : vector<1x128x512xbf16> to vector<128x512xbf16>
    %cst_25 = arith.constant dense<0.000000e+00> : vector<8x512xf32>
    %98 = tpu.matmul %94, %97, %cst_25 {dimension_numbers = #tpu.dot_dimension_numbers<[1], [0], [0], [1], [0, 0, 1, 1], [], []>} : vector<8x128xbf16>, vector<128x512xbf16>, vector<8x512xf32> -> vector<8x512xf32>
    %99 = vector.extract_strided_slice %98 {offsets = [0, 0], sizes = [8, 256], strides = [1, 1]} : vector<8x512xf32> to vector<8x256xf32>
    %cst_26 = arith.constant 5.000000e-01 : f32
    %100 = vector.broadcast %cst_26 : f32 to vector<8x256xf32>
    %101 = arith.mulf %100, %99 : vector<8x256xf32>
    %cst_27 = arith.constant 4.471500e-02 : f32
    %102 = vector.broadcast %cst_27 : f32 to vector<8x256xf32>
    %103 = arith.mulf %102, %99 : vector<8x256xf32>
    %104 = arith.mulf %103, %99 : vector<8x256xf32>
    %105 = arith.mulf %104, %99 : vector<8x256xf32>
    %106 = arith.addf %99, %105 : vector<8x256xf32>
    %cst_28 = arith.constant 0.797884583 : f32
    %107 = vector.broadcast %cst_28 : f32 to vector<8x256xf32>
    %108 = arith.mulf %107, %106 : vector<8x256xf32>
    %109 = math.tanh %108 : vector<8x256xf32>
    %cst_29 = arith.constant 1.000000e+00 : f32
    %110 = vector.broadcast %cst_29 : f32 to vector<8x256xf32>
    %111 = arith.addf %110, %109 : vector<8x256xf32>
    %112 = arith.mulf %101, %111 : vector<8x256xf32>
    %113 = vector.extract_strided_slice %98 {offsets = [0, 256], sizes = [8, 256], strides = [1, 1]} : vector<8x512xf32> to vector<8x256xf32>
    %114 = arith.mulf %112, %113 : vector<8x256xf32>
    %115 = arith.truncf %114 : vector<8x256xf32> to vector<8x256xbf16>
    %116 = arith.index_cast %c0_i32 : i32 to index
    %c0_30 = arith.constant 0 : index
    %c0_31 = arith.constant 0 : index
    %117 = vector.load %arg8[%116, %c0_30, %c0_31] : memref<2x256x128xbf16, #tpu.memory_space<vmem>>, vector<1x256x128xbf16>
    %118 = vector.shape_cast %117 : vector<1x256x128xbf16> to vector<256x128xbf16>
    %cst_32 = arith.constant dense<0.000000e+00> : vector<8x128xf32>
    %119 = tpu.matmul %115, %118, %cst_32 {dimension_numbers = #tpu.dot_dimension_numbers<[1], [0], [0], [1], [0, 0, 1, 1], [], []>} : vector<8x256xbf16>, vector<256x128xbf16>, vector<8x128xf32> -> vector<8x128xf32>
    %120 = arith.addf %78, %119 : vector<8x128xf32>
    %c1_i32 = arith.constant 1 : i32
    %121 = arith.mulf %120, %120 : vector<8x128xf32>
    %cst_33 = arith.constant dense<0.000000e+00> : vector<8xf32>
    %122 = vector.multi_reduction <add>, %121, %cst_33 [1] : vector<8x128xf32> to vector<8xf32>
    %123 = vector.shape_cast %122 : vector<8xf32> to vector<8x1xf32>
    %cst_34 = arith.constant 1.280000e+02 : f32
    %124 = vector.broadcast %cst_34 : f32 to vector<8x1xf32>
    %125 = arith.divf %123, %124 : vector<8x1xf32>
    %cst_35 = arith.constant 9.99999997E-7 : f32
    %126 = vector.broadcast %cst_35 : f32 to vector<8x1xf32>
    %127 = arith.addf %125, %126 : vector<8x1xf32>
    %128 = math.rsqrt %127 : vector<8x1xf32>
    %129 = vector.broadcast %128 : vector<8x1xf32> to vector<8x128xf32>
    %130 = arith.mulf %120, %129 : vector<8x128xf32>
    %131 = arith.index_cast %c1_i32 : i32 to index
    %c0_36 = arith.constant 0 : index
    %c0_37 = arith.constant 0 : index
    %132 = vector.load %arg3[%131, %c0_36, %c0_37] : memref<2x1x128xf32, #tpu.memory_space<vmem>>, vector<1x1x128xf32>
    %133 = vector.shape_cast %132 : vector<1x1x128xf32> to vector<1x128xf32>
    %134 = vector.broadcast %133 : vector<1x128xf32> to vector<8x128xf32>
    %135 = arith.mulf %130, %134 : vector<8x128xf32>
    %136 = arith.truncf %135 : vector<8x128xf32> to vector<8x128xbf16>
    %137 = arith.index_cast %c1_i32 : i32 to index
    %c0_38 = arith.constant 0 : index
    %c0_39 = arith.constant 0 : index
    %138 = vector.load %arg4[%137, %c0_38, %c0_39] : memref<2x128x384xbf16, #tpu.memory_space<vmem>>, vector<1x128x384xbf16>
    %139 = vector.shape_cast %138 : vector<1x128x384xbf16> to vector<128x384xbf16>
    %cst_40 = arith.constant dense<0.000000e+00> : vector<8x384xf32>
    %140 = tpu.matmul %136, %139, %cst_40 {dimension_numbers = #tpu.dot_dimension_numbers<[1], [0], [0], [1], [0, 0, 1, 1], [], []>} : vector<8x128xbf16>, vector<128x384xbf16>, vector<8x384xf32> -> vector<8x384xf32>
    %141 = arith.truncf %140 : vector<8x384xf32> to vector<8x384xbf16>
    %142 = vector.extract_strided_slice %141 {offsets = [0, 0], sizes = [8, 32], strides = [1, 1]} : vector<8x384xbf16> to vector<8x32xbf16>
    %143 = vector.extract_strided_slice %141 {offsets = [0, 32], sizes = [8, 32], strides = [1, 1]} : vector<8x384xbf16> to vector<8x32xbf16>
    %144 = vector.extract_strided_slice %141 {offsets = [0, 64], sizes = [8, 32], strides = [1, 1]} : vector<8x384xbf16> to vector<8x32xbf16>
    %145 = vector.extract_strided_slice %141 {offsets = [0, 96], sizes = [8, 32], strides = [1, 1]} : vector<8x384xbf16> to vector<8x32xbf16>
    %146 = vector.shape_cast %142 : vector<8x32xbf16> to vector<1x8x32xbf16>
    %147 = vector.shape_cast %143 : vector<8x32xbf16> to vector<1x8x32xbf16>
    %148 = vector.shape_cast %144 : vector<8x32xbf16> to vector<1x8x32xbf16>
    %149 = vector.shape_cast %145 : vector<8x32xbf16> to vector<1x8x32xbf16>
    %150 = tpu.concatenate %146, %147, %148, %149 in 0 : vector<1x8x32xbf16>, vector<1x8x32xbf16>, vector<1x8x32xbf16>, vector<1x8x32xbf16> -> vector<4x8x32xbf16>
    %151 = vector.extract_strided_slice %141 {offsets = [0, 128], sizes = [8, 32], strides = [1, 1]} : vector<8x384xbf16> to vector<8x32xbf16>
    %152 = vector.extract_strided_slice %141 {offsets = [0, 160], sizes = [8, 32], strides = [1, 1]} : vector<8x384xbf16> to vector<8x32xbf16>
    %153 = vector.extract_strided_slice %141 {offsets = [0, 192], sizes = [8, 32], strides = [1, 1]} : vector<8x384xbf16> to vector<8x32xbf16>
    %154 = vector.extract_strided_slice %141 {offsets = [0, 224], sizes = [8, 32], strides = [1, 1]} : vector<8x384xbf16> to vector<8x32xbf16>
    %155 = vector.shape_cast %151 : vector<8x32xbf16> to vector<1x8x32xbf16>
    %156 = vector.shape_cast %152 : vector<8x32xbf16> to vector<1x8x32xbf16>
    %157 = vector.shape_cast %153 : vector<8x32xbf16> to vector<1x8x32xbf16>
    %158 = vector.shape_cast %154 : vector<8x32xbf16> to vector<1x8x32xbf16>
    %159 = tpu.concatenate %155, %156, %157, %158 in 0 : vector<1x8x32xbf16>, vector<1x8x32xbf16>, vector<1x8x32xbf16>, vector<1x8x32xbf16> -> vector<4x8x32xbf16>
    %160 = vector.extract_strided_slice %141 {offsets = [0, 256], sizes = [8, 32], strides = [1, 1]} : vector<8x384xbf16> to vector<8x32xbf16>
    %161 = vector.extract_strided_slice %141 {offsets = [0, 288], sizes = [8, 32], strides = [1, 1]} : vector<8x384xbf16> to vector<8x32xbf16>
    %162 = vector.extract_strided_slice %141 {offsets = [0, 320], sizes = [8, 32], strides = [1, 1]} : vector<8x384xbf16> to vector<8x32xbf16>
    %163 = vector.extract_strided_slice %141 {offsets = [0, 352], sizes = [8, 32], strides = [1, 1]} : vector<8x384xbf16> to vector<8x32xbf16>
    %164 = vector.shape_cast %160 : vector<8x32xbf16> to vector<1x8x32xbf16>
    %165 = vector.shape_cast %161 : vector<8x32xbf16> to vector<1x8x32xbf16>
    %166 = vector.shape_cast %162 : vector<8x32xbf16> to vector<1x8x32xbf16>
    %167 = vector.shape_cast %163 : vector<8x32xbf16> to vector<1x8x32xbf16>
    %168 = tpu.concatenate %164, %165, %166, %167 in 0 : vector<1x8x32xbf16>, vector<1x8x32xbf16>, vector<1x8x32xbf16>, vector<1x8x32xbf16> -> vector<4x8x32xbf16>
    "tpu.trace_start"() <{level = 10 : i32, message = "hqd,hkd->hqk"}> : () -> ()
    %cst_41 = arith.constant dense<0.000000e+00> : vector<4x8x8xf32>
    %169 = tpu.matmul %150, %159, %cst_41 {dimension_numbers = #tpu.dot_dimension_numbers<[2], [2], [1], [1], [0, 0, 0, 1, 1, 1], [0], [0]>} : vector<4x8x32xbf16>, vector<4x8x32xbf16>, vector<4x8x8xf32> -> vector<4x8x8xf32>
    "tpu.trace_stop"() : () -> ()
    %170 = arith.addf %169, %1 : vector<4x8x8xf32>
    %cst_42 = arith.constant dense<0xFF800000> : vector<4x8xf32>
    %171 = vector.multi_reduction <maximumf>, %170, %cst_42 [2] : vector<4x8x8xf32> to vector<4x8xf32>
    %172 = vector.shape_cast %171 : vector<4x8xf32> to vector<4x8x1xf32>
    %173 = vector.broadcast %172 : vector<4x8x1xf32> to vector<4x8x8xf32>
    %174 = arith.subf %170, %173 : vector<4x8x8xf32>
    %175 = math.exp %174 : vector<4x8x8xf32>
    %cst_43 = arith.constant dense<0.000000e+00> : vector<4x8xf32>
    %176 = vector.multi_reduction <add>, %175, %cst_43 [2] : vector<4x8x8xf32> to vector<4x8xf32>
    %177 = vector.shape_cast %176 : vector<4x8xf32> to vector<4x8x1xf32>
    %178 = tpu.reciprocal %177 {approx = true} : vector<4x8x1xf32> -> vector<4x8x1xf32>
    %179 = vector.broadcast %178 : vector<4x8x1xf32> to vector<4x8x8xf32>
    %180 = arith.mulf %175, %179 : vector<4x8x8xf32>
    %181 = arith.truncf %180 : vector<4x8x8xf32> to vector<4x8x8xbf16>
    "tpu.trace_start"() <{level = 10 : i32, message = "hqk,hkd->hqd"}> : () -> ()
    %cst_44 = arith.constant dense<0.000000e+00> : vector<4x8x32xf32>
    %182 = tpu.matmul %181, %168, %cst_44 {dimension_numbers = #tpu.dot_dimension_numbers<[2], [1], [1], [2], [0, 0, 0, 1, 1, 2], [0], [0]>} : vector<4x8x8xbf16>, vector<4x8x32xbf16>, vector<4x8x32xf32> -> vector<4x8x32xf32>
    "tpu.trace_stop"() : () -> ()
    %183 = vector.extract_strided_slice %182 {offsets = [0, 0, 0], sizes = [1, 8, 32], strides = [1, 1, 1]} : vector<4x8x32xf32> to vector<1x8x32xf32>
    %184 = vector.shape_cast %183 : vector<1x8x32xf32> to vector<8x32xf32>
    %185 = vector.extract_strided_slice %182 {offsets = [1, 0, 0], sizes = [1, 8, 32], strides = [1, 1, 1]} : vector<4x8x32xf32> to vector<1x8x32xf32>
    %186 = vector.shape_cast %185 : vector<1x8x32xf32> to vector<8x32xf32>
    %187 = vector.extract_strided_slice %182 {offsets = [2, 0, 0], sizes = [1, 8, 32], strides = [1, 1, 1]} : vector<4x8x32xf32> to vector<1x8x32xf32>
    %188 = vector.shape_cast %187 : vector<1x8x32xf32> to vector<8x32xf32>
    %189 = vector.extract_strided_slice %182 {offsets = [3, 0, 0], sizes = [1, 8, 32], strides = [1, 1, 1]} : vector<4x8x32xf32> to vector<1x8x32xf32>
    %190 = vector.shape_cast %189 : vector<1x8x32xf32> to vector<8x32xf32>
    %191 = tpu.concatenate %184, %186, %188, %190 in 1 : vector<8x32xf32>, vector<8x32xf32>, vector<8x32xf32>, vector<8x32xf32> -> vector<8x128xf32>
    %192 = arith.truncf %191 : vector<8x128xf32> to vector<8x128xbf16>
    %193 = arith.index_cast %c1_i32 : i32 to index
    %c0_45 = arith.constant 0 : index
    %c0_46 = arith.constant 0 : index
    %194 = vector.load %arg5[%193, %c0_45, %c0_46] : memref<2x128x128xbf16, #tpu.memory_space<vmem>>, vector<1x128x128xbf16>
    %195 = vector.shape_cast %194 : vector<1x128x128xbf16> to vector<128x128xbf16>
    %cst_47 = arith.constant dense<0.000000e+00> : vector<8x128xf32>
    %196 = tpu.matmul %192, %195, %cst_47 {dimension_numbers = #tpu.dot_dimension_numbers<[1], [0], [0], [1], [0, 0, 1, 1], [], []>} : vector<8x128xbf16>, vector<128x128xbf16>, vector<8x128xf32> -> vector<8x128xf32>
    %197 = arith.addf %120, %196 : vector<8x128xf32>
    %198 = arith.mulf %197, %197 : vector<8x128xf32>
    %cst_48 = arith.constant dense<0.000000e+00> : vector<8xf32>
    %199 = vector.multi_reduction <add>, %198, %cst_48 [1] : vector<8x128xf32> to vector<8xf32>
    %200 = vector.shape_cast %199 : vector<8xf32> to vector<8x1xf32>
    %cst_49 = arith.constant 1.280000e+02 : f32
    %201 = vector.broadcast %cst_49 : f32 to vector<8x1xf32>
    %202 = arith.divf %200, %201 : vector<8x1xf32>
    %cst_50 = arith.constant 9.99999997E-7 : f32
    %203 = vector.broadcast %cst_50 : f32 to vector<8x1xf32>
    %204 = arith.addf %202, %203 : vector<8x1xf32>
    %205 = math.rsqrt %204 : vector<8x1xf32>
    %206 = vector.broadcast %205 : vector<8x1xf32> to vector<8x128xf32>
    %207 = arith.mulf %197, %206 : vector<8x128xf32>
    %208 = arith.index_cast %c1_i32 : i32 to index
    %c0_51 = arith.constant 0 : index
    %c0_52 = arith.constant 0 : index
    %209 = vector.load %arg6[%208, %c0_51, %c0_52] : memref<2x1x128xf32, #tpu.memory_space<vmem>>, vector<1x1x128xf32>
    %210 = vector.shape_cast %209 : vector<1x1x128xf32> to vector<1x128xf32>
    %211 = vector.broadcast %210 : vector<1x128xf32> to vector<8x128xf32>
    %212 = arith.mulf %207, %211 : vector<8x128xf32>
    %213 = arith.truncf %212 : vector<8x128xf32> to vector<8x128xbf16>
    %214 = arith.index_cast %c1_i32 : i32 to index
    %c0_53 = arith.constant 0 : index
    %c0_54 = arith.constant 0 : index
    %215 = vector.load %arg7[%214, %c0_53, %c0_54] : memref<2x128x512xbf16, #tpu.memory_space<vmem>>, vector<1x128x512xbf16>
    %216 = vector.shape_cast %215 : vector<1x128x512xbf16> to vector<128x512xbf16>
    %cst_55 = arith.constant dense<0.000000e+00> : vector<8x512xf32>
    %217 = tpu.matmul %213, %216, %cst_55 {dimension_numbers = #tpu.dot_dimension_numbers<[1], [0], [0], [1], [0, 0, 1, 1], [], []>} : vector<8x128xbf16>, vector<128x512xbf16>, vector<8x512xf32> -> vector<8x512xf32>
    %218 = vector.extract_strided_slice %217 {offsets = [0, 0], sizes = [8, 256], strides = [1, 1]} : vector<8x512xf32> to vector<8x256xf32>
    %cst_56 = arith.constant 5.000000e-01 : f32
    %219 = vector.broadcast %cst_56 : f32 to vector<8x256xf32>
    %220 = arith.mulf %219, %218 : vector<8x256xf32>
    %cst_57 = arith.constant 4.471500e-02 : f32
    %221 = vector.broadcast %cst_57 : f32 to vector<8x256xf32>
    %222 = arith.mulf %221, %218 : vector<8x256xf32>
    %223 = arith.mulf %222, %218 : vector<8x256xf32>
    %224 = arith.mulf %223, %218 : vector<8x256xf32>
    %225 = arith.addf %218, %224 : vector<8x256xf32>
    %cst_58 = arith.constant 0.797884583 : f32
    %226 = vector.broadcast %cst_58 : f32 to vector<8x256xf32>
    %227 = arith.mulf %226, %225 : vector<8x256xf32>
    %228 = math.tanh %227 : vector<8x256xf32>
    %cst_59 = arith.constant 1.000000e+00 : f32
    %229 = vector.broadcast %cst_59 : f32 to vector<8x256xf32>
    %230 = arith.addf %229, %228 : vector<8x256xf32>
    %231 = arith.mulf %220, %230 : vector<8x256xf32>
    %232 = vector.extract_strided_slice %217 {offsets = [0, 256], sizes = [8, 256], strides = [1, 1]} : vector<8x512xf32> to vector<8x256xf32>
    %233 = arith.mulf %231, %232 : vector<8x256xf32>
    %234 = arith.truncf %233 : vector<8x256xf32> to vector<8x256xbf16>
    %235 = arith.index_cast %c1_i32 : i32 to index
    %c0_60 = arith.constant 0 : index
    %c0_61 = arith.constant 0 : index
    %236 = vector.load %arg8[%235, %c0_60, %c0_61] : memref<2x256x128xbf16, #tpu.memory_space<vmem>>, vector<1x256x128xbf16>
    %237 = vector.shape_cast %236 : vector<1x256x128xbf16> to vector<256x128xbf16>
    %cst_62 = arith.constant dense<0.000000e+00> : vector<8x128xf32>
    %238 = tpu.matmul %234, %237, %cst_62 {dimension_numbers = #tpu.dot_dimension_numbers<[1], [0], [0], [1], [0, 0, 1, 1], [], []>} : vector<8x256xbf16>, vector<256x128xbf16>, vector<8x128xf32> -> vector<8x128xf32>
    %239 = arith.addf %197, %238 : vector<8x128xf32>
    %c2_i32 = arith.constant 2 : i32
    %240 = arith.mulf %239, %239 : vector<8x128xf32>
    %cst_63 = arith.constant dense<0.000000e+00> : vector<8xf32>
    %241 = vector.multi_reduction <add>, %240, %cst_63 [1] : vector<8x128xf32> to vector<8xf32>
    %242 = vector.shape_cast %241 : vector<8xf32> to vector<8x1xf32>
    %cst_64 = arith.constant 1.280000e+02 : f32
    %243 = vector.broadcast %cst_64 : f32 to vector<8x1xf32>
    %244 = arith.divf %242, %243 : vector<8x1xf32>
    %cst_65 = arith.constant 9.99999997E-7 : f32
    %245 = vector.broadcast %cst_65 : f32 to vector<8x1xf32>
    %246 = arith.addf %244, %245 : vector<8x1xf32>
    %247 = math.rsqrt %246 : vector<8x1xf32>
    %248 = vector.broadcast %247 : vector<8x1xf32> to vector<8x128xf32>
    %249 = arith.mulf %239, %248 : vector<8x128xf32>
    %c0_66 = arith.constant 0 : index
    %c0_67 = arith.constant 0 : index
    %250 = vector.load %arg9[%c0_66, %c0_67] : memref<1x128xf32, #tpu.memory_space<vmem>>, vector<1x128xf32>
    %251 = vector.broadcast %250 : vector<1x128xf32> to vector<8x128xf32>
    %252 = arith.mulf %249, %251 : vector<8x128xf32>
    %c0_68 = arith.constant 0 : index
    %c0_69 = arith.constant 0 : index
    %253 = vector.load %arg10[%c0_68, %c0_69] : memref<8x128xf32, #tpu.memory_space<vmem>>, vector<8x128xf32>
    tpu.vector_store %arg10[%c0_68, %c0_69], %252 {strides = array<i32>} : memref<8x128xf32, #tpu.memory_space<vmem>>, vector<8x128xf32>,
    return
  }
  func.func @transform_0(%arg0: i32) -> (i32, i32) {
    %c0_i32 = arith.constant 0 : i32
    %c0_i32_0 = arith.constant 0 : i32
    return %arg0, %c0_i32 : i32, i32
  }
  func.func @transform_1(%arg0: i32) -> (i32, i32, i32) {
    %c0_i32 = arith.constant 0 : i32
    %c0_i32_0 = arith.constant 0 : i32
    %c0_i32_1 = arith.constant 0 : i32
    return %arg0, %c0_i32, %c0_i32_0 : i32, i32, i32
  }
  func.func @transform_2(%arg0: i32) -> (i32, i32, i32) {
    %c0_i32 = arith.constant 0 : i32
    %c0_i32_0 = arith.constant 0 : i32
    %c0_i32_1 = arith.constant 0 : i32
    %c0_i32_2 = arith.constant 0 : i32
    return %c0_i32, %c0_i32_0, %c0_i32_1 : i32, i32, i32
  }
  func.func @transform_3(%arg0: i32) -> (i32, i32, i32) {
    %c0_i32 = arith.constant 0 : i32
    %c0_i32_0 = arith.constant 0 : i32
    %c0_i32_1 = arith.constant 0 : i32
    %c0_i32_2 = arith.constant 0 : i32
    return %c0_i32, %c0_i32_0, %c0_i32_1 : i32, i32, i32
  }
  func.func @transform_4(%arg0: i32) -> (i32, i32, i32) {
    %c0_i32 = arith.constant 0 : i32
    %c0_i32_0 = arith.constant 0 : i32
    %c0_i32_1 = arith.constant 0 : i32
    %c0_i32_2 = arith.constant 0 : i32
    return %c0_i32, %c0_i32_0, %c0_i32_1 : i32, i32, i32
  }
  func.func @transform_5(%arg0: i32) -> (i32, i32, i32) {
    %c0_i32 = arith.constant 0 : i32
    %c0_i32_0 = arith.constant 0 : i32
    %c0_i32_1 = arith.constant 0 : i32
    %c0_i32_2 = arith.constant 0 : i32
    return %c0_i32, %c0_i32_0, %c0_i32_1 : i32, i32, i32
  }
  func.func @transform_6(%arg0: i32) -> (i32, i32, i32) {
    %c0_i32 = arith.constant 0 : i32
    %c0_i32_0 = arith.constant 0 : i32
    %c0_i32_1 = arith.constant 0 : i32
    %c0_i32_2 = arith.constant 0 : i32
    return %c0_i32, %c0_i32_0, %c0_i32_1 : i32, i32, i32
  }
  func.func @transform_7(%arg0: i32) -> (i32, i32, i32) {
    %c0_i32 = arith.constant 0 : i32
    %c0_i32_0 = arith.constant 0 : i32
    %c0_i32_1 = arith.constant 0 : i32
    %c0_i32_2 = arith.constant 0 : i32
    return %c0_i32, %c0_i32_0, %c0_i32_1 : i32, i32, i32
  }
  func.func @transform_8(%arg0: i32) -> (i32, i32) {
    %c0_i32 = arith.constant 0 : i32
    %c0_i32_0 = arith.constant 0 : i32
    %c0_i32_1 = arith.constant 0 : i32
    return %c0_i32, %c0_i32_0 : i32, i32
  }
  func.func @transform_9(%arg0: i32) -> (i32, i32) {
    %c0_i32 = arith.constant 0 : i32
    %c0_i32_0 = arith.constant 0 : i32
    return %arg0, %c0_i32 : i32, i32
  }
}

</mosaic_0001>

<bundles_post_ra>
// kernel: t5_encoder_forward.1
= control target key start
LH: loop header
LB: loop body
LE: loop exit
PB: predicated region body
PF: predicated region fallthrough
CT: control target
= control target key end

     0   :  { %s4894_s0 = inlined_call_operand.vmem [shape: f32[16,128], index: 0, kind: input, shape index: {}]   ;;  %s4895_s1 = inlined_call_operand.vmem [shape: f32[8,8,8], index: 1, kind: input, shape index: {}]   ;;  %s4896_s2 = inlined_call_operand.vmem [shape: f32[2,1,128], index: 2, kind: input, shape index: {}]   ;;  %s4897_s3 = inlined_call_operand.vmem [shape: bf16[2,128,384], index: 3, kind: input, shape index: {}]   ;;  %s4898_s4 = inlined_call_operand.vmem [shape: bf16[2,128,128], index: 4, kind: input, shape index: {}]   ;;  %s4899_s5 = inlined_call_operand.vmem [shape: f32[2,1,128], index: 5, kind: input, shape index: {}]   ;;  %s4900_s6 = inlined_call_operand.vmem [shape: bf16[2,128,512], index: 6, kind: input, shape index: {}]   ;;  %s4901_s7 = inlined_call_operand.vmem [shape: bf16[2,256,128], index: 7, kind: input, shape index: {}]   ;;  %s4902_s8 = inlined_call_operand.vmem [shape: f32[1,128], index: 8, kind: input, shape index: {}]   ;;  %s4903_s9 = inlined_call_operand.hbm [shape: f32[16,128], index: 9, kind: output, shape index: {}]  }
   0x1   :  { %4908 = sst [smem:[#allocation5_spill]] %s4894_s0 }
   0x2   :  { %14 = vsyncpa [#allocation3], 0 }
   0x3   :  { %16 = vsyncpa [#allocation3 + $0x1], 0  ;;  %s4084_s30 = smov 0   ;;  %s4086_s10 = smov 0  }
   0x4   :  { %s4088_s11 = smov 0   ;;  %s4090_s12 = smov 0  }
   0x5 LB: > { %s4105_s13 = sadd.s32 4294967295, %s4025_s12   ;;  %s3067_s14 = sadd.s32 4294967294, %s4025_s12   ;;  %s4025_s12 = sphi %s4090_s12, %s4917_s12   ;;  %s4021_s11 = sphi %s4088_s11, %s4916_s11   ;;  %s4017_s10 = sphi %s4086_s10, %s4915_s10   ;;  %s4013_s30 = sphi %s4084_s30, %s4914_s30  }
   0x6   : > { %s4109_s15 = sadd.s32 1, %s4025_s12   ;;  %s228_s16 = sadd.s32 1, %s4021_s11 }
   0x7   : > { %s225_s17 = ssub.s32 %s4025_s12, %s4109_s15  ;;  %p238_p0 = scmp.ne.s32.totalorder %s4021_s11, %s4017_s10 }
   0x8   : > { %p226_p1 = scmp.eq.s32.totalorder %s225_s17, 0  ;;  %p239_p2 = scmp.eq.s32.totalorder %s4105_s13, 1 }
   0x9   : > { %p244_p3 = scmp.ne.s32.totalorder %s4017_s10, %s4013_s30  ;;  %p245_p4 = scmp.eq.s32.totalorder %s3067_s14, 1 }
   0xa   : > { %s4120_s18 = scalar_select %p226_p1, %s4021_s11, %s228_s16  }
   0xb   : > { %p4122_p5 = por %p239_p2, %p238_p0  ;;  %p4126_p6 = por %p245_p4, %p244_p3 }
   0xc   : > { %p3070_p7 = scmp.ge.s32.totalorder %s4025_s12, 1  ;;  %p300_p8 = scmp.lt.s32.totalorder %s4025_s12, 3 }
   0xe   : > { %p301_p9 = pnand %p3070_p7, %p300_p8 }
   0xf   : > { %p340_p10 = scmp.lt.s32.totalorder (!%p301_p9), %s4105_s13, 1  ;;  %s4911_s0 = sld [smem:[#allocation5_spill]] (!%p301_p9) }
  0x10   : > { %304 = sbr.rel (%p301_p9) target bundleno = 4397 (0x112d), region = 56  ;;  %s4906_s28 = smov (!%p301_p9), 96  }
  0x11   : > { %s4031_s29 = smov (!%p301_p9), 64   ;;  %s4904_s14 = smov (!%p301_p9), 32  }
  0x12   : > { %s3073_s16 = sshll.u32 (!%p301_p9), %s4105_s13, 2 }
  0x13   : > { %p345_p11 = scmp.lt.s32.totalorder (!%p301_p9), %s3073_s16, 7 }
  0x15   : > { %v3707_v0 = vld [vmem:[%s4897_s3 + $0xac] ss:$12 sps:$4 sm:$0xff]   ;;  %v4027_v1 = vmov 0.0   ;;  %v3709_v2 = vld [vmem:[%s4897_s3 + $0xa8] ss:$12 sps:$4 sm:$0xff]   ;;  %s341_s25 = scalar_select %p340_p10, %s4105_s13, 1 }
  0x16   : > { %3486 = vmatprep.subr.bf16.mxu1 %v4027_v1  ;;  %533 = vmatprep.subr.bf16.mxu0 %v3707_v0  ;;  %v3710_v3 = vld [vmem:[%s4897_s3 + $0xb0] ss:$12 sps:$4 sm:$0xff]   ;;  %v3711_v4 = vld [vmem:[%s4897_s3 + $0x94] ss:$12 sps:$4 sm:$0xff]   ;;  %v3714_v6 = vld [vmem:[%s4897_s3 + $0x98] ss:$12 sps:$4 sm:$0xff]  }
  0x17   : > { %534 = vmatpush1.bf16.msra.mxu0 %v3709_v2  ;;  %v3713_v5 = vld [vmem:[%s4897_s3 + $0x90] ss:$12 sps:$4 sm:$0xff]   ;;  %s3072_s17 = sshll.u32 %s341_s25, 3  ;;  %3487 = vmatpush3.bf16.msra.mxu1 %v3710_v3  ;;  %v3717_v10 = vld [vmem:[%s4897_s3 + $0x78] ss:$12 sps:$4 sm:$0xff]   ;;  %v4028_v24 = vmov 0  }
  0x18   : > { %s343_s26 = scalar_lea.vmem %s4911_s0, %s3072_s17  ;;  %535 = vmatprep.subr.bf16.mxu0 %v3711_v4  ;;  %3488 = vmatprep.subr.bf16.mxu1 %v4027_v1  ;;  %v3715_v9 = vld [vmem:[%s4897_s3 + $0x7c] ss:$12 sps:$4 sm:$0xff]   ;;  %v3718_v11 = vld [vmem:[%s4897_s3 + $0x80] ss:$12 sps:$4 sm:$0xff]   ;;  %v3719_v12 = vld [vmem:[%s4897_s3 + $0x64] ss:$12 sps:$4 sm:$0xff]  }
  0x19   : > { %v4157_v7 = vld [vmem:[%s343_s26] sm:$0xff]  ;;  %v3722_v14 = vld [vmem:[%s4897_s3 + $0x68] ss:$12 sps:$4 sm:$0xff]   ;;  %v3723_v15 = vld [vmem:[%s4897_s3 + $0x4c] ss:$12 sps:$4 sm:$0xff]   ;;  %565 = vmatprep.mubr.bf16.mxu0 %v4028_v24  ;;  %vm4029_vm0 = vmmov 0  }
  0x1a   : > { %v356_v8 = vmul.f32 %v4157_v7, %v4157_v7  ;;  %v3721_v13 = vld [vmem:[%s4897_s3 + $0x60] ss:$12 sps:$4 sm:$0xff]   ;;  %v3725_v16 = vld [vmem:[%s4897_s3 + $0x48] ss:$12 sps:$4 sm:$0xff]   ;;  %v3726_v17 = vld [vmem:[%s4897_s3 + $0x50] ss:$12 sps:$4 sm:$0xff]   ;;  %3502 = vmatprep.mubr.msk.bf16.mxu1 %vm4029_vm0, %v4027_v1 }
  0x1b   : > { %536 = vmatpush1.bf16.msra.mxu0 %v3713_v5  ;;  %3489 = vmatpush3.bf16.msra.mxu1 %v3714_v6  ;;  %v3727_v18 = vld [vmem:[%s4897_s3 + $0x34] ss:$12 sps:$4 sm:$0xff]   ;;  %v3729_v19 = vld [vmem:[%s4897_s3 + $0x30] ss:$12 sps:$4 sm:$0xff]   ;;  %v3730_v20 = vld [vmem:[%s4897_s3 + $0x38] ss:$12 sps:$4 sm:$0xff]  }
  0x1c   : > { %357 = vadd.xlane.f32.xlu0 %v356_v8  ;;  %3490 = vmatprep.subr.bf16.mxu1 %v4027_v1  ;;  %v3731_v21 = vld [vmem:[%s4897_s3 + $0x1c] ss:$12 sps:$4 sm:$0xff]   ;;  %v3733_v22 = vld [vmem:[%s4897_s3 + $0x18] ss:$12 sps:$4 sm:$0xff]   ;;  %v3734_v23 = vld [vmem:[%s4897_s3 + $0x20] ss:$12 sps:$4 sm:$0xff]  }
  0x1d   : > { %537 = vmatprep.subr.bf16.mxu0 %v3715_v9  ;;  %v3735_v25 = vld [vmem:[%s4897_s3 + $0x4] ss:$12 sps:$4 sm:$0xff]   ;;  %v3737_v26 = vld [vmem:[%s4897_s3] ss:$12 sps:$4 sm:$0xff]   ;;  %v3738_v27 = vld [vmem:[%s4897_s3 + $0x8] ss:$12 sps:$4 sm:$0xff]  }
  0x1e   : > { %v3075_v32 = vld [vmem:[%s4896_s2] ss:$0 sm:$0xff]  ;;  %vm638_vm1 = vcmask 261120   ;;  %vm875_vm2 = vcmask 1043456   ;;  %s4919_s16 = smov (!%p345_p11, %s3073_s16), 7  ;;  %vm823_vm3 = vcmask 64512  }
  0x1f   : > { %538 = vmatpush1.bf16.msra.mxu0 %v3717_v10  ;;  %3491 = vmatpush3.bf16.msra.mxu1 %v3718_v11  ;;  %s3074_s17 = sshll.u32 %s4919_s16, 3  ;;  %vm1070_vm4 = vcmask 523264   ;;  %vm1072_vm5 = vcmask 785408   ;;  %s3371_s16 = sshll.u32 %s4105_s13, 7 }
  0x20   : > { %3492 = vmatprep.subr.bf16.mxu1 %v4027_v1  ;;  %539 = vmatprep.subr.bf16.mxu0 %v3719_v12  ;;  %s348_s23 = scalar_lea.vmem %s4895_s1, %s3074_s17  ;;  %s2994_s24 = scalar_lea.hbm %s4903_s9, %s3371_s16 }
  0x21   : > { %v4269_v58 = vld [vmem:[%s348_s23] sm:$0xff]  ;;  %v4273_v2 = vld [vmem:[%s348_s23 + $0x8] sm:$0xff]  ;;  %v4275_v4 = vld [vmem:[%s348_s23 + $0x10] sm:$0xff]  ;;  %s4033_s0 = smov [#allocation2]  }
  0x22   : > { %s3969_s25 = sshll.u32 %s4033_s0, 4  ;;  %s3970_s25 = int_to_ptr.vmem [resolvable:$false] %s3969_s25 }
  0x23   : > { %540 = vmatpush1.bf16.msra.mxu0 %v3721_v13  ;;  %3493 = vmatpush3.bf16.msra.mxu1 %v3722_v14  ;;  %s3971_s13 = scalar_lea.vmem %s3970_s25, 256 }
  0x24   : > { %541 = vmatprep.subr.bf16.mxu0 %v3723_v15  ;;  %3494 = vmatprep.subr.bf16.mxu1 %v4027_v1 }
  0x27   : > { %542 = vmatpush1.bf16.msra.mxu0 %v3725_v16  ;;  %3495 = vmatpush3.bf16.msra.mxu1 %v3726_v17  ;;  %v4281_v16 = vld [vmem:[%s348_s23 + $0x18] sm:$0xff] }
  0x28   : > { %543 = vmatprep.subr.bf16.mxu0 %v3727_v18  ;;  %3496 = vmatprep.subr.bf16.mxu1 %v4027_v1 }
  0x2b   : > { %544 = vmatpush1.bf16.msra.mxu0 %v3729_v19  ;;  %3497 = vmatpush3.bf16.msra.mxu1 %v3730_v20 }
  0x2c   : > { %545 = vmatprep.subr.bf16.mxu0 %v3731_v21  ;;  %3498 = vmatprep.subr.bf16.mxu1 %v4027_v1 }
  0x2f   : > { %546 = vmatpush1.bf16.msra.mxu0 %v3733_v22  ;;  %3499 = vmatpush3.bf16.msra.mxu1 %v3734_v23 }
  0x30   : > { %547 = vmatprep.subr.bf16.mxu0 %v3735_v25  ;;  %3500 = vmatprep.subr.bf16.mxu1 %v4027_v1 }
  0x33   : > { %548 = vmatpush1.bf16.msra.mxu0 %v3737_v26  ;;  %3501 = vmatpush3.bf16.msra.mxu1 %v3738_v27 }
  0x34   : > { %3506 = vmatprep.subr.bf16.mxu0 %v4027_v1  ;;  %3512 = vmatprep.subr.bf16.mxu1 %v4027_v1 }
  0xa5   : > { %v358_v28 = vpop.xlane.xlu0 %357 }
  0xa6   : > { %v360_v29 = vmul.f32 0.0078125, %v358_v28 }
  0xa8   : > { %v361_v30 = vadd.f32 1e-06, %v360_v29 }
  0xaa   : > { %3915 = vrsqrt.f32 %v361_v30 }
  0xb7   : > { %v3916_v31 = vpop.eup %3915 }
  0xb8   : > { %v363_v33 = vmul.f32 %v3916_v31, %v4157_v7 }
  0xba   : > { %v371_v34 = vmul.f32 %v3075_v32, %v363_v33 }
  0xbc   : > { %v372_v35 = vpack.c.bf16 %v371_v34, %v371_v34 }
  0xbe   : > { %566 = vmatmul.mubr.bf16.vlgmr.msra.gmra.mxu0 %v372_v35  ;;  %3503 = vmatmul.mubr.bf16.vlgmr.msra.gmra.mxu1 %v372_v35 }
  0xbf   : > { %3508 = vmatprep.mubr.msk.bf16.mxu0 %vm4029_vm0, %v4027_v1  ;;  %3514 = vmatprep.mubr.msk.bf16.mxu1 %vm4029_vm0, %v4027_v1 }
 0x17e   : > { %v567_v36 = vpop.f32.mrf.mxu0  ;;  %v608_v37 = vpop.f32.mrf.mxu1 }
 0x17f   : > { %v614_v38 = vpack.c.bf16 %v567_v36, %v567_v36  ;;  %v4249_v53 = vpack.c.bf16 %v608_v37, %v608_v37 }
 0x180   : > { %v569_v39 = vpop.f32.mrf.mxu0  ;;  %v3504_v40 = vpop.f32.mrf.mxu1 }
 0x181   : > { %v615_v41 = vpack.c.bf16 %v569_v39, %v569_v39  ;;  %618 = vrot.lane.b32.xlu1 %v614_v38, %s4906_s28  ;;  %v877_v56 = vsel %vm875_vm2, %v4249_v53, 0 }
 0x182   : > { %v571_v42 = vpop.f32.mrf.mxu0  ;;  %v611_v43 = vpop.f32.mrf.mxu1 }
 0x183   : > { %625 = vrot.lane.b32.xlu0 %v615_v41, %s4906_s28  ;;  %v643_v44 = vsel %vm638_vm1, %v615_v41, 0 }
 0x184   : > { %v572_v45 = vpop.f32.mrf.mxu0  ;;  %v3505_v46 = vpop.f32.mrf.mxu1  ;;  %3507 = vmatpush3.bf16.xpose.msra.mxu0 %v643_v44 }
 0x185   : > { %627 = vrot.lane.b32.xlu1 %v615_v41, %s4031_s29  ;;  %3518 = vmatprep.subr.bf16.mxu0 %v4027_v1 }
 0x189   : > { %629 = vrot.lane.b32.xlu1 %v615_v41, %s4904_s14 }
 0x18b   : > { %3509 = vmatmul.mubr.msk.bf16.vlgmr.msra.gmra.mxu0 %vm638_vm1, %v614_v38 }
 0x18c   : > { %3520 = vmatprep.mubr.msk.bf16.mxu0 %vm4029_vm0, %v4027_v1 }
 0x18d   : > { %620 = vrot.lane.b32.xlu1 %v614_v38, %s4031_s29 }
 0x191   : > { %622 = vrot.lane.b32.xlu1 %v614_v38, %s4904_s14 }
 0x1f3   : > { %v619_v47 = vpop.permute.xlu1 %618 }
 0x1f5   : > { %v626_v48 = vpop.permute.xlu0 %625 }
 0x1f6   : > { %v689_v49 = vsel %vm638_vm1, %v626_v48, 0 }
 0x1f7   : > { %v628_v50 = vpop.permute.xlu1 %627  ;;  %3513 = vmatpush3.bf16.xpose.msra.mxu1 %v689_v49 }
 0x1f8   : > { %v735_v51 = vsel %vm638_vm1, %v628_v50, 0  ;;  %3524 = vmatprep.subr.bf16.mxu1 %v4027_v1 }
 0x1f9   : > { %3519 = vmatpush3.bf16.xpose.msra.mxu0 %v735_v51 }
 0x1fa   : > { %3530 = vmatprep.subr.bf16.mxu0 %v4027_v1 }
 0x1fb   : > { %v630_v52 = vpop.permute.xlu1 %629 }
 0x1fc   : > { %v781_v54 = vsel %vm638_vm1, %v630_v52, 0 }
 0x1fe   : > { %3515 = vmatmul.mubr.msk.bf16.vlgmr.msra.gmra.mxu1 %vm638_vm1, %v619_v47 }
 0x1ff   : > { %v621_v55 = vpop.permute.xlu1 %620  ;;  %3525 = vmatpush3.bf16.xpose.msra.mxu1 %v781_v54  ;;  %3526 = vmatprep.mubr.msk.bf16.mxu1 %vm4029_vm0, %v4027_v1 }
 0x200   : > { %3521 = vmatmul.mubr.msk.bf16.vlgmr.msra.gmra.mxu0 %vm638_vm1, %v621_v55  ;;  %3536 = vmatprep.subr.bf16.mxu1 %v4027_v1 }
 0x201   : > { %3531 = vmatpush3.bf16.msra.mxu0 %v877_v56  ;;  %3532 = vmatprep.mubr.msk.bf16.mxu0 %vm4029_vm0, %v4027_v1 }
 0x202   : > { %3542 = vmatprep.subr.bf16.mxu0 %v4027_v1 }
 0x203   : > { %v623_v57 = vpop.permute.xlu1 %622 }
 0x206   : > { %3527 = vmatmul.mubr.msk.bf16.vlgmr.msra.gmra.mxu1 %vm638_vm1, %v623_v57 }
 0x207   : > { %3538 = vmatprep.mubr.msk.bf16.mxu1 %vm4029_vm0, %v4027_v1 }
 0x24b   : > { %v679_v59 = vpop.f32.mrf.mxu0 }
 0x24c   : > { %v680_v60 = vadd.f32 %v679_v59, %v4269_v58 }
 0x24d   : > { %v3510_v61 = vpop.f32.mrf.mxu0 }
 0x24e   : > { %v824_v62 = vsel %vm823_vm3, %v680_v60, -inf }
 0x24f   : > { %825 = vmax.xlane.f32.xlu1 %v824_v62  ;;  %v682_v63 = vpop.f32.mrf.mxu0 }
 0x251   : > { %v3511_v0 = vpop.f32.mrf.mxu0 }
 0x2be   : > { %v725_v3 = vpop.f32.mrf.mxu1 }
 0x2bf   : > { %v726_v5 = vadd.f32 %v725_v3, %v4273_v2 }
 0x2c0   : > { %v3516_v6 = vpop.f32.mrf.mxu1  ;;  %v771_v8 = vpop.f32.mrf.mxu0 }
 0x2c1   : > { %v772_v9 = vadd.f32 %v771_v8, %v4275_v4  ;;  %v827_v10 = vsel %vm823_vm3, %v726_v5, -inf  ;;  %v3739_v8 = vld [vmem:[%s4898_s4 + $0x38] sm:$0xff]  }
 0x2c2   : > { %828 = vmax.xlane.f32.xlu0 %v827_v10  ;;  %v728_v11 = vpop.f32.mrf.mxu1  ;;  %v3522_v12 = vpop.f32.mrf.mxu0  ;;  %v3741_v10 = vld [vmem:[%s4898_s4 + $0x28] sm:$0xff]  }
 0x2c3   : > { %v830_v13 = vsel %vm823_vm3, %v772_v9, -inf  ;;  %v3742_v11 = vld [vmem:[%s4898_s4 + $0x20] sm:$0xff]  }
 0x2c4   : > { %v3517_v14 = vpop.f32.mrf.mxu1  ;;  %831 = vmax.xlane.f32.xlu1 %v830_v13  ;;  %v774_v15 = vpop.f32.mrf.mxu0 }
 0x2c5   : > { %v3743_v14 = vld [vmem:[%s4898_s4 + $0x18] sm:$0xff]  }
 0x2c6   : > { %v3523_v17 = vpop.f32.mrf.mxu0  ;;  %v817_v18 = vpop.f32.mrf.mxu1 }
 0x2c7   : > { %v818_v19 = vadd.f32 %v817_v18, %v4281_v16  ;;  %v3744_v18 = vld [vmem:[%s4898_s4 + $0x10] sm:$0xff]  }
 0x2c8   : > { %v3528_v20 = vpop.f32.mrf.mxu1 }
 0x2c9   : > { %v833_v21 = vsel %vm823_vm3, %v818_v19, -inf  ;;  %v3746_v20 = vld [vmem:[%s4898_s4] sm:$0xff]  }
 0x2ca   : > { %834 = vmax.xlane.f32.xlu0 %v833_v21  ;;  %v820_v22 = vpop.f32.mrf.mxu1 }
 0x2cc   : > { %v3529_v23 = vpop.f32.mrf.mxu1 }
 0x2d5   : > { %632 = vrot.lane.b32.xlu1 %v4249_v53, %s4906_s28 }
 0x2d8   : > { %v826_v25 = vpop.xlane.xlu1 %825 }
 0x2d9   : > { %v836_v26 = vsub.f32 %v680_v60, %v826_v25 }
 0x2db   : > { %v840_v27 = vmul.f32 1.442695, %v836_v26 }
 0x2dd   : > { %3917 = vpow2.f32 %v840_v27 }
 0x2ea   : > { %v3918_v28 = vpop.eup %3917 }
 0x2eb   : > { %v848_v29 = vsel %vm823_vm3, %v3918_v28, 0.0 }
 0x2f9   : > { %849 = vadd.xlane.f32.xlu1 %v848_v29 }
 0x34b   : > { %v829_v30 = vpop.xlane.xlu0 %828 }
 0x34c   : > { %v837_v31 = vsub.f32 %v726_v5, %v829_v30 }
 0x34d   : > { %v832_v32 = vpop.xlane.xlu1 %831 }
 0x34e   : > { %v842_v33 = vmul.f32 1.442695, %v837_v31  ;;  %v838_v34 = vsub.f32 %v772_v9, %v832_v32  ;;  %v3740_v9 = vld [vmem:[%s4898_s4 + $0x30] sm:$0xff]  }
 0x350   : > { %3919 = vpow2.f32 %v842_v33  ;;  %v844_v35 = vmul.f32 1.442695, %v838_v34 }
 0x351   : > { %v633_v36 = vpop.permute.xlu1 %632 }
 0x352   : > { %3921 = vpow2.f32 %v844_v35  ;;  %v923_v37 = vsel %vm875_vm2, %v633_v36, 0 }
 0x353   : > { %v835_v38 = vpop.xlane.xlu0 %834  ;;  %3537 = vmatpush3.bf16.msra.mxu1 %v923_v37 }
 0x354   : > { %v839_v39 = vsub.f32 %v818_v19, %v835_v38  ;;  %3548 = vmatprep.subr.bf16.mxu1 %v4027_v1  ;;  %v3745_v19 = vld [vmem:[%s4898_s4 + $0x8] sm:$0xff]  }
 0x356   : > { %v846_v40 = vmul.f32 1.442695, %v839_v39 }
 0x358   : > { %3923 = vpow2.f32 %v846_v40 }
 0x35d   : > { %v3920_v41 = vpop.eup %3919 }
 0x35e   : > { %v851_v42 = vsel %vm823_vm3, %v3920_v41, 0.0 }
 0x35f   : > { %v3922_v43 = vpop.eup %3921  ;;  %852 = vadd.xlane.f32.xlu0 %v851_v42  ;;  %v3749_v42 = vld [vmem:[%s4900_s6 + $0xe4] ss:$16 sps:$4 sm:$0xff]  }
 0x360   : > { %v854_v44 = vsel %vm823_vm3, %v3922_v43, 0.0 }
 0x361   : > { %855 = vadd.xlane.f32.xlu1 %v854_v44  ;;  %v3752_v44 = vld [vmem:[%s4900_s6 + $0xec] ss:$16 sps:$4 sm:$0xff]  }
 0x365   : > { %v3924_v45 = vpop.eup %3923 }
 0x366   : > { %v857_v46 = vsel %vm823_vm3, %v3924_v45, 0.0 }
 0x367   : > { %858 = vadd.xlane.f32.xlu0 %v857_v46  ;;  %v3758_v46 = vld [vmem:[%s4900_s6 + $0xcc] ss:$16 sps:$4 sm:$0xff]  }
 0x372   : > { %636 = vrot.lane.b32.xlu1 %v4249_v53, %s4904_s14 }
 0x37d   : > { %634 = vrot.lane.b32.xlu0 %v4249_v53, %s4031_s29 }
 0x382   : > { %v850_v47 = vpop.xlane.xlu1 %849 }
 0x383   : > { %3925 = vrcp.f32 %v850_v47  ;;  %v3753_v47 = vld [vmem:[%s4900_s6 + $0xc0] ss:$16 sps:$4 sm:$0xff]  }
 0x390   : > { %v3926_v48 = vpop.eup %3925 }
 0x391   : > { %v864_v49 = vmul.f32 %v3926_v48, %v3918_v28  ;;  %v3756_v48 = vld [vmem:[%s4900_s6 + $0xc8] ss:$16 sps:$4 sm:$0xff]  }
 0x393   : > { %v868_v50 = vpack.c.bf16 %v864_v49, %v864_v49 }
 0x395   : > { %3533 = vmatmul.mubr.msk.bf16.vlgmr.msra.gmra.mxu0 %vm823_vm3, %v868_v50 }
 0x396   : > { %3544 = vmatprep.mubr.msk.bf16.mxu0 %vm4029_vm0, %v4027_v1 }
 0x3e8   : > { %v853_v51 = vpop.xlane.xlu0 %852 }
 0x3e9   : > { %3927 = vrcp.f32 %v853_v51 }
 0x3ea   : > { %v856_v52 = vpop.xlane.xlu1 %855 }
 0x3eb   : > { %3929 = vrcp.f32 %v856_v52 }
 0x3ee   : > { %v637_v60 = vpop.permute.xlu1 %636 }
 0x3ef   : > { %v1015_v63 = vsel %vm875_vm2, %v637_v60, 0  ;;  %v3770_v60 = vld [vmem:[%s4900_s6 + $0x8c] ss:$16 sps:$4 sm:$0xff]  }
 0x3f0   : > { %v859_v54 = vpop.xlane.xlu0 %858 }
 0x3f1   : > { %3931 = vrcp.f32 %v859_v54 }
 0x3f4   : > { %v635_v55 = vpop.permute.xlu0 %634 }
 0x3f5   : > { %v969_v56 = vsel %vm875_vm2, %v635_v55, 0 }
 0x3f6   : > { %v3928_v53 = vpop.eup %3927  ;;  %3543 = vmatpush3.bf16.msra.mxu0 %v969_v56  ;;  %v3761_v56 = vld [vmem:[%s4900_s6 + $0xa4] ss:$16 sps:$4 sm:$0xff]  }
 0x3f7   : > { %v865_v57 = vmul.f32 %v3928_v53, %v3920_v41  ;;  %3554 = vmatprep.subr.bf16.mxu0 %v4027_v1  ;;  %v3747_v41 = vld [vmem:[%s4900_s6 + $0xe0] ss:$16 sps:$4 sm:$0xff]   ;;  %v3764_v53 = vld [vmem:[%s4900_s6 + $0xac] ss:$16 sps:$4 sm:$0xff]  }
 0x3f8   : > { %v3930_v59 = vpop.eup %3929 }
 0x3f9   : > { %v869_v61 = vpack.c.bf16 %v865_v57, %v865_v57  ;;  %v866_v62 = vmul.f32 %v3930_v59, %v3922_v43  ;;  %v3750_v43 = vld [vmem:[%s4900_s6 + $0xe8] ss:$16 sps:$4 sm:$0xff]   ;;  %v3767_v59 = vld [vmem:[%s4900_s6 + $0x84] ss:$16 sps:$4 sm:$0xff]  }
 0x3fa   : > { %v3762_v57 = vld [vmem:[%s4900_s6 + $0xa8] ss:$16 sps:$4 sm:$0xff]  }
 0x3fb   : > { %3539 = vmatmul.mubr.msk.bf16.vlgmr.msra.gmra.mxu1 %vm823_vm3, %v869_v61  ;;  %v870_v0 = vpack.c.bf16 %v866_v62, %v866_v62  ;;  %v3765_v61 = vld [vmem:[%s4900_s6 + $0x80] ss:$16 sps:$4 sm:$0xff]   ;;  %v3768_v62 = vld [vmem:[%s4900_s6 + $0x88] ss:$16 sps:$4 sm:$0xff]  }
 0x3fc   : > { %3549 = vmatpush3.bf16.msra.mxu1 %v1015_v63  ;;  %3550 = vmatprep.mubr.msk.bf16.mxu1 %vm4029_vm0, %v4027_v1  ;;  %v3773_v63 = vld [vmem:[%s4900_s6 + $0x64] ss:$16 sps:$4 sm:$0xff]  }
 0x3fd   : > { %3545 = vmatmul.mubr.msk.bf16.vlgmr.msra.gmra.mxu0 %vm823_vm3, %v870_v0  ;;  %1388 = vmatprep.subr.bf16.mxu1 %v3749_v42  ;;  %v3776_v0 = vld [vmem:[%s4900_s6 + $0x6c] ss:$16 sps:$4 sm:$0xff]  }
 0x3fe   : > { %v3932_v3 = vpop.eup %3931  ;;  %3570 = vmatprep.mubr.msk.bf16.mxu0 %vm4029_vm0, %v4027_v1  ;;  %3555 = vmatpush3.bf16.msra.mxu0 %v3739_v8  ;;  %v3782_v8 = vld [vmem:[%s4900_s6 + $0x4c] ss:$16 sps:$4 sm:$0xff]  }
 0x3ff   : > { %v867_v5 = vmul.f32 %v3932_v3, %v3924_v45  ;;  %3556 = vmatprep.subr.bf16.mxu0 %v4027_v1  ;;  %v3755_v45 = vld [vmem:[%s4900_s6 + $0xc4] ss:$16 sps:$4 sm:$0xff]   ;;  %v3771_v3 = vld [vmem:[%s4900_s6 + $0x60] ss:$16 sps:$4 sm:$0xff]   ;;  %v3808_v42 = vld [vmem:[%s4901_s7 + $0x8] sm:$0xff]  }
 0x401   : > { %v871_v6 = vpack.c.bf16 %v867_v5, %v867_v5  ;;  %v3774_v5 = vld [vmem:[%s4900_s6 + $0x68] ss:$16 sps:$4 sm:$0xff]  }
 0x402   : > { %3557 = vmatpush3.bf16.msra.mxu0 %v3740_v9  ;;  %v3777_v9 = vld [vmem:[%s4900_s6 + $0x40] ss:$16 sps:$4 sm:$0xff]  }
 0x403   : > { %3551 = vmatmul.mubr.msk.bf16.vlgmr.msra.gmra.mxu1 %vm823_vm3, %v871_v6  ;;  %3558 = vmatprep.subr.bf16.mxu0 %v4027_v1  ;;  %v3779_v6 = vld [vmem:[%s4900_s6 + $0x44] ss:$16 sps:$4 sm:$0xff]  }
 0x404   : > { %1420 = vmatprep.mubr.bf16.mxu1 %v4028_v24  ;;  %1389 = vmatpush1.bf16.msra.mxu1 %v3747_v41  ;;  %v3807_v41 = vld [vmem:[%s4901_s7 + $0x48] sm:$0xff]  }
 0x405   : > { %1390 = vmatprep.subr.bf16.mxu1 %v3755_v45 }
 0x406   : > { %3559 = vmatpush3.bf16.msra.mxu0 %v3741_v10  ;;  %v3780_v10 = vld [vmem:[%s4900_s6 + $0x48] ss:$16 sps:$4 sm:$0xff]  }
 0x407   : > { %3560 = vmatprep.subr.bf16.mxu0 %v4027_v1 }
 0x408   : > { %1391 = vmatpush1.bf16.msra.mxu1 %v3753_v47 }
 0x409   : > { %1392 = vmatprep.subr.bf16.mxu1 %v3761_v56 }
 0x40a   : > { %3561 = vmatpush3.bf16.msra.mxu0 %v3742_v11  ;;  %v3785_v11 = vld [vmem:[%s4900_s6 + $0x24] ss:$16 sps:$4 sm:$0xff]  }
 0x40b   : > { %3562 = vmatprep.subr.bf16.mxu0 %v4027_v1 }
 0x40e   : > { %3563 = vmatpush3.bf16.msra.mxu0 %v3743_v14  ;;  %v3786_v14 = vld [vmem:[%s4900_s6 + $0x28] ss:$16 sps:$4 sm:$0xff]  }
 0x40f   : > { %3564 = vmatprep.subr.bf16.mxu0 %v4027_v1 }
 0x412   : > { %3565 = vmatpush3.bf16.msra.mxu0 %v3744_v18  ;;  %v3789_v18 = vld [vmem:[%s4900_s6] ss:$16 sps:$4 sm:$0xff]  }
 0x413   : > { %3566 = vmatprep.subr.bf16.mxu0 %v4027_v1 }
 0x416   : > { %3567 = vmatpush3.bf16.msra.mxu0 %v3745_v19  ;;  %v3792_v19 = vld [vmem:[%s4900_s6 + $0x8] ss:$16 sps:$4 sm:$0xff]  }
 0x417   : > { %3568 = vmatprep.subr.bf16.mxu0 %v4027_v1 }
 0x41a   : > { %3569 = vmatpush3.bf16.msra.mxu0 %v3746_v20 }
 0x41b   : > { %1429 = vmatprep.subr.bf16.mxu0 %v3752_v44  ;;  %v3810_v44 = vld [vmem:[%s4901_s7] sm:$0xff]  }
 0x455   : > { %v913_v12 = vpop.f32.mrf.mxu0 }
 0x457   : > { %v3534_v13 = vpop.f32.mrf.mxu0 }
 0x458   : > { %v3783_v13 = vld [vmem:[%s4900_s6 + $0x20] ss:$16 sps:$4 sm:$0xff]  }
 0x459   : > { %v916_v15 = vpop.f32.mrf.mxu0 }
 0x45a   : > { %v3791_v15 = vld [vmem:[%s4900_s6 + $0x4] ss:$16 sps:$4 sm:$0xff]  }
 0x45b   : > { %v3535_v17 = vpop.f32.mrf.mxu0 }
 0x45c   : > { %v3794_v17 = vld [vmem:[%s4900_s6 + $0xc] ss:$16 sps:$4 sm:$0xff]  }
 0x4bb   : > { %v959_v21 = vpop.f32.mrf.mxu1 }
 0x4bc   : > { %1058 = vrot.lane.b32.xlu1 %v959_v21, %s4904_s14  ;;  %s4913_s14 = smov 32  }
 0x4bd   : > { %v3540_v22 = vpop.f32.mrf.mxu1  ;;  %v1005_v23 = vpop.f32.mrf.mxu0 }
 0x4be   : > { %1062 = vrot.lane.b32.xlu0 %v1005_v23, %s4031_s29 }
 0x4bf   : > { %v962_v25 = vpop.f32.mrf.mxu1  ;;  %v3546_v26 = vpop.f32.mrf.mxu0 }
 0x4c0   : > { %v3116_v25 = vld [vmem:[%s4899_s5] ss:$0 sm:$0xff] }
 0x4c1   : > { %v3541_v27 = vpop.f32.mrf.mxu1  ;;  %v1008_v28 = vpop.f32.mrf.mxu0 }
 0x4c3   : > { %v3547_v29 = vpop.f32.mrf.mxu0  ;;  %v1051_v30 = vpop.f32.mrf.mxu1 }
 0x4c4   : > { %1066 = vrot.lane.b32.xlu1 %v1051_v30, %s4906_s28  ;;  %v3795_v29 = vld [vmem:[%s4901_s7 + $0x78] sm:$0xff]   ;;  %s4912_s28 = smov 96  }
 0x4c5   : > { %v3552_v31 = vpop.f32.mrf.mxu1  ;;  %v3796_v30 = vld [vmem:[%s4901_s7 + $0x38] sm:$0xff]  }
 0x4c6   : > { %v3797_v31 = vld [vmem:[%s4901_s7 + $0x70] sm:$0xff]  }
 0x4c7   : > { %v1054_v32 = vpop.f32.mrf.mxu1 }
 0x4c8   : > { %v3798_v32 = vld [vmem:[%s4901_s7 + $0x30] sm:$0xff]  }
 0x4c9   : > { %v3553_v33 = vpop.f32.mrf.mxu1 }
 0x4ca   : > { %v3799_v33 = vld [vmem:[%s4901_s7 + $0x68] sm:$0xff]  }
 0x52e   : > { %v1059_v34 = vpop.permute.xlu1 %1058 }
 0x52f   : > { %v1069_v35 = vsel %vm638_vm1, %v913_v12, %v1059_v34  ;;  %v3788_v12 = vld [vmem:[%s4900_s6 + $0x2c] ss:$16 sps:$4 sm:$0xff]  }
 0x530   : > { %v1063_v36 = vpop.permute.xlu0 %1062  ;;  %v3800_v34 = vld [vmem:[%s4901_s7 + $0x28] sm:$0xff]  }
 0x531   : > { %v1071_v37 = vsel %vm1070_vm4, %v1069_v35, %v1063_v36  ;;  %v3801_v35 = vld [vmem:[%s4901_s7 + $0x60] sm:$0xff]  }
 0x532   : > { %v3802_v36 = vld [vmem:[%s4901_s7 + $0x20] sm:$0xff]  }
 0x536   : > { %v1067_v38 = vpop.permute.xlu1 %1066 }
 0x537   : > { %v1073_v39 = vsel %vm1072_vm5, %v1071_v37, %v1067_v38  ;;  %v3803_v37 = vld [vmem:[%s4901_s7 + $0x58] sm:$0xff]  }
 0x538   : > { %v1074_v40 = vpack.c.bf16 %v1073_v39, %v1073_v39  ;;  %v3804_v38 = vld [vmem:[%s4901_s7 + $0x18] sm:$0xff]   ;;  %v3805_v39 = vld [vmem:[%s4901_s7 + $0x50] sm:$0xff]  }
 0x53a   : > { %3571 = vmatmul.mubr.bf16.vlgmr.msra.gmra.mxu0 %v1074_v40  ;;  %v3806_v40 = vld [vmem:[%s4901_s7 + $0x10] sm:$0xff]  }
 0x53b   : > { %1461 = vmatprep.mubr.bf16.mxu0 %v4028_v24  ;;  %1430 = vmatpush1.bf16.msra.mxu0 %v3750_v43  ;;  %v3809_v43 = vld [vmem:[%s4901_s7 + $0x40] sm:$0xff]  }
 0x53c   : > { %1431 = vmatprep.subr.bf16.mxu0 %v3758_v46 }
 0x53f   : > { %1432 = vmatpush1.bf16.msra.mxu0 %v3756_v48 }
 0x540   : > { %1433 = vmatprep.subr.bf16.mxu0 %v3764_v53 }
 0x543   : > { %1434 = vmatpush1.bf16.msra.mxu0 %v3762_v57 }
 0x544   : > { %1435 = vmatprep.subr.bf16.mxu0 %v3770_v60 }
 0x547   : > { %1436 = vmatpush1.bf16.msra.mxu0 %v3768_v62 }
 0x548   : > { %1437 = vmatprep.subr.bf16.mxu0 %v3776_v0 }
 0x54b   : > { %1438 = vmatpush1.bf16.msra.mxu0 %v3774_v5 }
 0x54c   : > { %1439 = vmatprep.subr.bf16.mxu0 %v3782_v8 }
 0x54f   : > { %1440 = vmatpush1.bf16.msra.mxu0 %v3780_v10 }
 0x550   : > { %1441 = vmatprep.subr.bf16.mxu0 %v3788_v12 }
 0x553   : > { %1442 = vmatpush1.bf16.msra.mxu0 %v3786_v14 }
 0x554   : > { %1443 = vmatprep.subr.bf16.mxu0 %v3794_v17  ;;  %v3811_v17 = vld [vmem:[%s4897_s3 + $0x168] ss:$12 sps:$4 sm:$0xff]  }
 0x557   : > { %1444 = vmatpush1.bf16.msra.mxu0 %v3792_v19  ;;  %v3814_v19 = vld [vmem:[%s4897_s3 + $0x170] ss:$12 sps:$4 sm:$0xff]  }
 0x5fa   : > { %v1173_v49 = vpop.f32.mrf.mxu0 }
 0x5fb   : > { %v4374_v50 = vadd.f32 %v1173_v49, %v4157_v7  ;;  %v3759_v7 = vld [vmem:[%s4900_s6 + $0xa0] ss:$16 sps:$4 sm:$0xff]  }
 0x5fc   : > { %v3572_v51 = vpop.f32.mrf.mxu0  ;;  %1393 = vmatpush1.bf16.msra.mxu1 %v3759_v7 }
 0x5fd   : > { %v1180_v52 = vmul.f32 %v4374_v50, %v4374_v50  ;;  %1394 = vmatprep.subr.bf16.mxu1 %v3767_v59 }
 0x5fe   : > { %v1176_v54 = vpop.f32.mrf.mxu0 }
 0x5ff   : > { %1181 = vadd.xlane.f32.xlu0 %v1180_v52 }
 0x600   : > { %v3573_v55 = vpop.f32.mrf.mxu0  ;;  %1395 = vmatpush1.bf16.msra.mxu1 %v3765_v61 }
 0x601   : > { %1396 = vmatprep.subr.bf16.mxu1 %v3773_v63 }
 0x604   : > { %1397 = vmatpush1.bf16.msra.mxu1 %v3771_v3 }
 0x605   : > { %1398 = vmatprep.subr.bf16.mxu1 %v3779_v6 }
 0x608   : > { %1399 = vmatpush1.bf16.msra.mxu1 %v3777_v9 }
 0x609   : > { %1400 = vmatprep.subr.bf16.mxu1 %v3785_v11 }
 0x60c   : > { %1401 = vmatpush1.bf16.msra.mxu1 %v3783_v13 }
 0x60d   : > { %1402 = vmatprep.subr.bf16.mxu1 %v3791_v15 }
 0x610   : > { %1403 = vmatpush1.bf16.msra.mxu1 %v3789_v18  ;;  %v3813_v18 = vld [vmem:[%s4897_s3 + $0x16c] ss:$12 sps:$4 sm:$0xff]  }
 0x611   : > { %3408 = vmatprep.subr.bf16.mxu1 %v3795_v29  ;;  %1839 = vmatprep.subr.bf16.mxu0 %v3813_v18 }
 0x688   : > { %v1182_v20 = vpop.xlane.xlu0 %1181 }
 0x689   : > { %v1183_v21 = vmul.f32 0.0078125, %v1182_v20  ;;  %v3817_v20 = vld [vmem:[%s4897_s3 + $0x154] ss:$12 sps:$4 sm:$0xff]  }
 0x68b   : > { %v1184_v22 = vadd.f32 1e-06, %v1183_v21  ;;  %v3818_v21 = vld [vmem:[%s4897_s3 + $0x158] ss:$12 sps:$4 sm:$0xff]  }
 0x68d   : > { %3933 = vrsqrt.f32 %v1184_v22  ;;  %v3815_v22 = vld [vmem:[%s4897_s3 + $0x150] ss:$12 sps:$4 sm:$0xff]  }
 0x69a   : > { %v3934_v23 = vpop.eup %3933 }
 0x69b   : > { %v1186_v26 = vmul.f32 %v3934_v23, %v4374_v50 }
 0x69d   : > { %v1194_v27 = vmul.f32 %v3116_v25, %v1186_v26 }
 0x69f   : > { %v1195_v28 = vpack.c.bf16 %v1194_v27, %v1194_v27 }
 0x6a1   : > { %1421 = vmatmul.mubr.bf16.vlgmr.msra.gmra.mxu1 %v1195_v28  ;;  %1462 = vmatmul.mubr.bf16.vlgmr.msra.gmra.mxu0 %v1195_v28 }
 0x6a2   : > { %1871 = vmatprep.mubr.bf16.mxu0 %v4028_v24  ;;  %3409 = vmatpush3.bf16.msra.mxu1 %v3796_v30 }
 0x6a3   : > { %3410 = vmatprep.subr.bf16.mxu1 %v3797_v31  ;;  %1840 = vmatpush1.bf16.msra.mxu0 %v3811_v17  ;;  %v3821_v31 = vld [vmem:[%s4897_s3 + $0x13c] ss:$12 sps:$4 sm:$0xff]  }
 0x6a4   : > { %1841 = vmatprep.subr.bf16.mxu0 %v3817_v20 }
 0x6a6   : > { %3411 = vmatpush3.bf16.msra.mxu1 %v3798_v32  ;;  %v3819_v32 = vld [vmem:[%s4897_s3 + $0x138] ss:$12 sps:$4 sm:$0xff]  }
 0x6a7   : > { %3412 = vmatprep.subr.bf16.mxu1 %v3799_v33  ;;  %1842 = vmatpush1.bf16.msra.mxu0 %v3815_v22  ;;  %v3822_v33 = vld [vmem:[%s4897_s3 + $0x140] ss:$12 sps:$4 sm:$0xff]  }
 0x6a8   : > { %1843 = vmatprep.subr.bf16.mxu0 %v3821_v31 }
 0x6aa   : > { %3413 = vmatpush3.bf16.msra.mxu1 %v3800_v34  ;;  %v3823_v34 = vld [vmem:[%s4897_s3 + $0x120] ss:$12 sps:$4 sm:$0xff]  }
 0x6ab   : > { %3414 = vmatprep.subr.bf16.mxu1 %v3801_v35  ;;  %1844 = vmatpush1.bf16.msra.mxu0 %v3819_v32  ;;  %v3826_v35 = vld [vmem:[%s4897_s3 + $0x128] ss:$12 sps:$4 sm:$0xff]  }
 0x6ae   : > { %3415 = vmatpush3.bf16.msra.mxu1 %v3802_v36  ;;  %v3829_v36 = vld [vmem:[%s4897_s3 + $0x10c] ss:$12 sps:$4 sm:$0xff]  }
 0x6af   : > { %3416 = vmatprep.subr.bf16.mxu1 %v3803_v37  ;;  %v3827_v37 = vld [vmem:[%s4897_s3 + $0x108] ss:$12 sps:$4 sm:$0xff]  }
 0x6b2   : > { %3417 = vmatpush3.bf16.msra.mxu1 %v3804_v38  ;;  %v3830_v38 = vld [vmem:[%s4897_s3 + $0x110] ss:$12 sps:$4 sm:$0xff]  }
 0x6b3   : > { %3418 = vmatprep.subr.bf16.mxu1 %v3805_v39  ;;  %v3833_v39 = vld [vmem:[%s4897_s3 + $0xf4] ss:$12 sps:$4 sm:$0xff]  }
 0x6b6   : > { %3419 = vmatpush3.bf16.msra.mxu1 %v3806_v40  ;;  %v3831_v40 = vld [vmem:[%s4897_s3 + $0xf0] ss:$12 sps:$4 sm:$0xff]  }
 0x6b7   : > { %3420 = vmatprep.subr.bf16.mxu1 %v3807_v41  ;;  %v3834_v41 = vld [vmem:[%s4897_s3 + $0xf8] ss:$12 sps:$4 sm:$0xff]  }
 0x6ba   : > { %3421 = vmatpush3.bf16.msra.mxu1 %v3808_v42  ;;  %v3837_v42 = vld [vmem:[%s4897_s3 + $0xdc] ss:$12 sps:$4 sm:$0xff]  }
 0x6bb   : > { %3422 = vmatprep.subr.bf16.mxu1 %v3809_v43  ;;  %v3835_v43 = vld [vmem:[%s4897_s3 + $0xd8] ss:$12 sps:$4 sm:$0xff]  }
 0x6be   : > { %3423 = vmatpush3.bf16.msra.mxu1 %v3810_v44  ;;  %v3838_v44 = vld [vmem:[%s4897_s3 + $0xe0] ss:$12 sps:$4 sm:$0xff]  }
 0x6bf   : > { %3574 = vmatprep.subr.bf16.mxu1 %v4027_v1 }
 0x761   : > { %v1422_v45 = vpop.f32.mrf.mxu1  ;;  %v1463_v46 = vpop.f32.mrf.mxu0 }
 0x762   : > { %v1472_v47 = vmul.f32 0.044715, %v1422_v45  ;;  %v1470_v3 = vmul.f32 0.5, %v1422_v45 }
 0x763   : > { %v1424_v48 = vpop.f32.mrf.mxu1  ;;  %v1465_v49 = vpop.f32.mrf.mxu0 }
 0x764   : > { %v1474_v51 = vmul.f32 %v1472_v47, %v1422_v45  ;;  %v1473_v52 = vmul.f32 0.044715, %v1424_v48  ;;  %v1471_v9 = vmul.f32 0.5, %v1424_v48  ;;  %v3842_v47 = vld [vmem:[%s4897_s3 + $0xc8] ss:$12 sps:$4 sm:$0xff]  }
 0x765   : > { %v1426_v54 = vpop.f32.mrf.mxu1  ;;  %v1467_v55 = vpop.f32.mrf.mxu0 }
 0x766   : > { %v1476_v56 = vmul.f32 %v1474_v51, %v1422_v45  ;;  %v1475_v53 = vmul.f32 %v1473_v52, %v1424_v48  ;;  %v3166_v54 = vld [vmem:[%s4896_s2 + $0x1] ss:$0 sm:$0xff] }
 0x767   : > { %v1427_v7 = vpop.f32.mrf.mxu1  ;;  %v1468_v57 = vpop.f32.mrf.mxu0 }
 0x768   : > { %v1478_v59 = vadd.f32 %v1476_v56, %v1422_v45  ;;  %v1477_v60 = vmul.f32 %v1475_v53, %v1424_v48  ;;  %v3841_v45 = vld [vmem:[%s4897_s3 + $0xc4] ss:$12 sps:$4 sm:$0xff]  }
 0x76a   : > { %v1480_v61 = vmul.f32 0.7978846, %v1478_v59  ;;  %v1479_v62 = vadd.f32 %v1477_v60, %v1424_v48 }
 0x76c   : > { %3935 = vtanh.f32 %v1480_v61  ;;  %v1481_v63 = vmul.f32 0.7978846, %v1479_v62 }
 0x76e   : > { %3937 = vtanh.f32 %v1481_v63 }
 0x779   : > { %v3936_v0 = vpop.eup %3935 }
 0x77a   : > { %v1484_v5 = vadd.f32 1.0, %v3936_v0 }
 0x77b   : > { %v3938_v6 = vpop.eup %3937 }
 0x77c   : > { %v1486_v8 = vmul.f32 %v1484_v5, %v1470_v3  ;;  %v1485_v10 = vadd.f32 1.0, %v3938_v6 }
 0x77e   : > { %v1487_v11 = vmul.f32 %v1485_v10, %v1471_v9  ;;  %v1488_v12 = vmul.f32 %v1486_v8, %v1463_v46  ;;  %v3839_v46 = vld [vmem:[%s4897_s3 + $0xc0] ss:$12 sps:$4 sm:$0xff]  }
 0x780   : > { %v1489_v13 = vmul.f32 %v1487_v11, %v1465_v49  ;;  %v1490_v15 = vpack.c.bf16 %v1488_v12, %v1488_v12 }
 0x782   : > { %v1491_v14 = vpack.c.bf16 %v1489_v13, %v1489_v13 }
 0x784   : > { %1652 = vmatprep.mubr.bf16.mxu1 %v1491_v14 }
 0x785   : > { %1653 = vmatmul.mubr.bf16.vlgmr.msra.gmra.mxu1 %v1490_v15 }
 0x786   : > { %3590 = vmatprep.mubr.msk.bf16.mxu1 %vm4029_vm0, %v4027_v1  ;;  %3575 = vmatpush3.bf16.msra.mxu1 %v3814_v19 }
 0x787   : > { %3576 = vmatprep.subr.bf16.mxu1 %v4027_v1 }
 0x78a   : > { %3577 = vmatpush3.bf16.msra.mxu1 %v3818_v21 }
 0x78b   : > { %3578 = vmatprep.subr.bf16.mxu1 %v4027_v1 }
 0x78e   : > { %3579 = vmatpush3.bf16.msra.mxu1 %v3822_v33 }
 0x78f   : > { %3580 = vmatprep.subr.bf16.mxu1 %v4027_v1 }
 0x792   : > { %3581 = vmatpush3.bf16.msra.mxu1 %v3826_v35 }
 0x793   : > { %3582 = vmatprep.subr.bf16.mxu1 %v4027_v1 }
 0x796   : > { %3583 = vmatpush3.bf16.msra.mxu1 %v3830_v38 }
 0x797   : > { %3584 = vmatprep.subr.bf16.mxu1 %v4027_v1 }
 0x79a   : > { %3585 = vmatpush3.bf16.msra.mxu1 %v3834_v41 }
 0x79b   : > { %3586 = vmatprep.subr.bf16.mxu1 %v4027_v1 }
 0x79e   : > { %3587 = vmatpush3.bf16.msra.mxu1 %v3838_v44 }
 0x79f   : > { %3588 = vmatprep.subr.bf16.mxu1 %v4027_v1 }
 0x7a2   : > { %3589 = vmatpush3.bf16.msra.mxu1 %v3842_v47 }
 0x7a3   : > { %3600 = vmatprep.subr.bf16.mxu1 %v4027_v1 }
 0x845   : > { %v3424_v23 = vpop.f32.mrf.mxu1 }
 0x847   : > { %v3425_v25 = vpop.f32.mrf.mxu1 }
 0x848   : > { %v3426_v26 = vadd.f32 %v3425_v25, %v3424_v23 }
 0x849   : > { %v3427_v27 = vpop.f32.mrf.mxu1 }
 0x84a   : > { %v4527_v28 = vadd.f32 %v3426_v26, %v4374_v50  ;;  %v3825_v50 = vld [vmem:[%s4897_s3 + $0x124] ss:$12 sps:$4 sm:$0xff]  }
 0x84b   : > { %v3428_v29 = vpop.f32.mrf.mxu1  ;;  %1845 = vmatprep.subr.bf16.mxu0 %v3825_v50 }
 0x84c   : > { %v1661_v30 = vmul.f32 %v4527_v28, %v4527_v28  ;;  %1846 = vmatpush1.bf16.msra.mxu0 %v3823_v34 }
 0x84d   : > { %1847 = vmatprep.subr.bf16.mxu0 %v3829_v36 }
 0x84e   : > { %1662 = vadd.xlane.f32.xlu1 %v1661_v30 }
 0x850   : > { %1848 = vmatpush1.bf16.msra.mxu0 %v3827_v37 }
 0x851   : > { %1849 = vmatprep.subr.bf16.mxu0 %v3833_v39 }
 0x854   : > { %1850 = vmatpush1.bf16.msra.mxu0 %v3831_v40 }
 0x855   : > { %1851 = vmatprep.subr.bf16.mxu0 %v3837_v42 }
 0x858   : > { %1852 = vmatpush1.bf16.msra.mxu0 %v3835_v43 }
 0x859   : > { %1853 = vmatprep.subr.bf16.mxu0 %v3841_v45 }
 0x85c   : > { %1854 = vmatpush1.bf16.msra.mxu0 %v3839_v46 }
 0x85d   : > { %3594 = vmatprep.subr.bf16.mxu0 %v4027_v1 }
 0x8d7   : > { %v1663_v48 = vpop.xlane.xlu1 %1662 }
 0x8d8   : > { %v1664_v49 = vmul.f32 0.0078125, %v1663_v48 }
 0x8da   : > { %v1665_v51 = vadd.f32 1e-06, %v1664_v49 }
 0x8dc   : > { %3939 = vrsqrt.f32 %v1665_v51 }
 0x8e9   : > { %v3940_v52 = vpop.eup %3939 }
 0x8ea   : > { %v1667_v55 = vmul.f32 %v3940_v52, %v4527_v28 }
 0x8ec   : > { %v1676_v56 = vmul.f32 %v3166_v54, %v1667_v55 }
 0x8ee   : > { %v1677_v53 = vpack.c.bf16 %v1676_v56, %v1676_v56 }
 0x8f0   : > { %1872 = vmatmul.mubr.bf16.vlgmr.msra.gmra.mxu0 %v1677_v53  ;;  %3591 = vmatmul.mubr.bf16.vlgmr.msra.gmra.mxu1 %v1677_v53 }
 0x8f1   : > { %3596 = vmatprep.mubr.msk.bf16.mxu0 %vm4029_vm0, %v4027_v1  ;;  %3602 = vmatprep.mubr.msk.bf16.mxu1 %vm4029_vm0, %v4027_v1 }
 0x9b0   : > { %v1873_v7 = vpop.f32.mrf.mxu0  ;;  %v1914_v57 = vpop.f32.mrf.mxu1 }
 0x9b1   : > { %v1920_v6 = vpack.c.bf16 %v1873_v7, %v1873_v7  ;;  %v4615_v13 = vpack.c.bf16 %v1914_v57, %v1914_v57 }
 0x9b2   : > { %v1875_v59 = vpop.f32.mrf.mxu0  ;;  %v3592_v60 = vpop.f32.mrf.mxu1 }
 0x9b3   : > { %v1921_v61 = vpack.c.bf16 %v1875_v59, %v1875_v59  ;;  %v2180_v18 = vsel %vm875_vm2, %v4615_v13, 0 }
 0x9b4   : > { %v1877_v62 = vpop.f32.mrf.mxu0  ;;  %v1917_v63 = vpop.f32.mrf.mxu1 }
 0x9b5   : > { %1933 = vrot.lane.b32.xlu1 %v1921_v61, %s4031_s29  ;;  %1931 = vrot.lane.b32.xlu0 %v1921_v61, %s4912_s28  ;;  %v1948_v0 = vsel %vm638_vm1, %v1921_v61, 0 }
 0x9b6   : > { %v1878_v3 = vpop.f32.mrf.mxu0  ;;  %v3593_v5 = vpop.f32.mrf.mxu1  ;;  %3595 = vmatpush3.bf16.xpose.msra.mxu0 %v1948_v0 }
 0x9b7   : > { %3606 = vmatprep.subr.bf16.mxu0 %v4027_v1 }
 0x9b9   : > { %1935 = vrot.lane.b32.xlu1 %v1921_v61, %s4913_s14  ;;  %1924 = vrot.lane.b32.xlu0 %v1920_v6, %s4912_s28 }
 0x9bd   : > { %1928 = vrot.lane.b32.xlu1 %v1920_v6, %s4913_s14  ;;  %1926 = vrot.lane.b32.xlu0 %v1920_v6, %s4031_s29 }
 0x9be   : > { %3597 = vmatmul.mubr.msk.bf16.vlgmr.msra.gmra.mxu0 %vm638_vm1, %v1920_v6 }
 0x9bf   : > { %3608 = vmatprep.mubr.msk.bf16.mxu0 %vm4029_vm0, %v4027_v1 }
 0xa27   : > { %v1934_v8 = vpop.permute.xlu1 %1933  ;;  %v1932_v9 = vpop.permute.xlu0 %1931 }
 0xa28   : > { %v2040_v10 = vsel %vm638_vm1, %v1934_v8, 0  ;;  %v1994_v11 = vsel %vm638_vm1, %v1932_v9, 0 }
 0xa29   : > { %3601 = vmatpush3.bf16.xpose.msra.mxu1 %v1994_v11  ;;  %3607 = vmatpush3.bf16.xpose.msra.mxu0 %v2040_v10 }
 0xa2a   : > { %3612 = vmatprep.subr.bf16.mxu1 %v4027_v1  ;;  %3618 = vmatprep.subr.bf16.mxu0 %v4027_v1 }
 0xa2b   : > { %v1925_v12 = vpop.permute.xlu0 %1924  ;;  %v1936_v14 = vpop.permute.xlu1 %1935 }
 0xa2c   : > { %v2086_v17 = vsel %vm638_vm1, %v1936_v14, 0 }
 0xa2f   : > { %v1927_v15 = vpop.permute.xlu0 %1926  ;;  %v1929_v19 = vpop.permute.xlu1 %1928 }
 0xa30   : > { %3603 = vmatmul.mubr.msk.bf16.vlgmr.msra.gmra.mxu1 %vm638_vm1, %v1925_v12  ;;  %3609 = vmatmul.mubr.msk.bf16.vlgmr.msra.gmra.mxu0 %vm638_vm1, %v1927_v15 }
 0xa31   : > { %3613 = vmatpush3.bf16.xpose.msra.mxu1 %v2086_v17  ;;  %3619 = vmatpush3.bf16.msra.mxu0 %v2180_v18 }
 0xa32   : > { %3614 = vmatprep.mubr.msk.bf16.mxu1 %vm4029_vm0, %v4027_v1  ;;  %3624 = vmatprep.subr.bf16.mxu1 %v4027_v1 }
 0xa33   : > { %3620 = vmatprep.mubr.msk.bf16.mxu0 %vm4029_vm0, %v4027_v1  ;;  %3630 = vmatprep.subr.bf16.mxu0 %v4027_v1 }
 0xa38   : > { %3615 = vmatmul.mubr.msk.bf16.vlgmr.msra.gmra.mxu1 %vm638_vm1, %v1929_v19 }
 0xa39   : > { %3626 = vmatprep.mubr.msk.bf16.mxu1 %vm4029_vm0, %v4027_v1 }
 0xa7e   : > { %v1984_v20 = vpop.f32.mrf.mxu0 }
 0xa7f   : > { %v1985_v21 = vadd.f32 %v1984_v20, %v4269_v58 }
 0xa80   : > { %v3598_v22 = vpop.f32.mrf.mxu0 }
 0xa81   : > { %v2128_v23 = vsel %vm823_vm3, %v1985_v21, -inf }
 0xa82   : > { %2129 = vmax.xlane.f32.xlu0 %v2128_v23  ;;  %v1987_v25 = vpop.f32.mrf.mxu0 }
 0xa84   : > { %v3599_v26 = vpop.f32.mrf.mxu0 }
 0xa85   : > { %v3843_v26 = vld [vmem:[%s4898_s4 + $0x78] sm:$0xff]  }
 0xaf0   : > { %v2030_v27 = vpop.f32.mrf.mxu1  ;;  %v2076_v29 = vpop.f32.mrf.mxu0 }
 0xaf1   : > { %v2031_v30 = vadd.f32 %v2030_v27, %v4273_v2  ;;  %v2077_v31 = vadd.f32 %v2076_v29, %v4275_v4  ;;  %v3844_v27 = vld [vmem:[%s4898_s4 + $0x70] sm:$0xff]   ;;  %v3845_v29 = vld [vmem:[%s4898_s4 + $0x68] sm:$0xff]  }
 0xaf2   : > { %v3604_v32 = vpop.f32.mrf.mxu1  ;;  %v3610_v33 = vpop.f32.mrf.mxu0 }
 0xaf3   : > { %v2131_v50 = vsel %vm823_vm3, %v2031_v30, -inf  ;;  %v2134_v34 = vsel %vm823_vm3, %v2077_v31, -inf }
 0xaf4   : > { %2132 = vmax.xlane.f32.xlu1 %v2131_v50  ;;  %v2033_v58 = vpop.f32.mrf.mxu1  ;;  %2135 = vmax.xlane.f32.xlu0 %v2134_v34  ;;  %v2079_v35 = vpop.f32.mrf.mxu0  ;;  %v3847_v50 = vld [vmem:[%s4898_s4 + $0x58] sm:$0xff]  }
 0xaf5   : > { %v3848_v58 = vld [vmem:[%s4898_s4 + $0x50] sm:$0xff]   ;;  %v3849_v35 = vld [vmem:[%s4898_s4 + $0x48] sm:$0xff]  }
 0xaf6   : > { %v3605_v36 = vpop.f32.mrf.mxu1  ;;  %v3611_v37 = vpop.f32.mrf.mxu0 }
 0xaf7   : > { %v3850_v36 = vld [vmem:[%s4898_s4 + $0x40] sm:$0xff]  }
 0xaf8   : > { %v2122_v38 = vpop.f32.mrf.mxu1 }
 0xaf9   : > { %v2123_v39 = vadd.f32 %v2122_v38, %v4281_v16 }
 0xafa   : > { %v3616_v40 = vpop.f32.mrf.mxu1 }
 0xafb   : > { %v2137_v2 = vsel %vm823_vm3, %v2123_v39, -inf }
 0xafc   : > { %v2125_v41 = vpop.f32.mrf.mxu1  ;;  %2138 = vmax.xlane.f32.xlu0 %v2137_v2 }
 0xafe   : > { %v3617_v4 = vpop.f32.mrf.mxu1 }
 0xb05   : > { %1938 = vrot.lane.b32.xlu1 %v4615_v13, %s4912_s28 }
 0xb0b   : > { %v2130_v42 = vpop.xlane.xlu0 %2129 }
 0xb0c   : > { %v2140_v43 = vsub.f32 %v1985_v21, %v2130_v42 }
 0xb0e   : > { %v2144_v44 = vmul.f32 1.442695, %v2140_v43 }
 0xb10   : > { %3941 = vpow2.f32 %v2144_v44 }
 0xb1d   : > { %v3942_v45 = vpop.eup %3941 }
 0xb1e   : > { %v2152_v46 = vsel %vm823_vm3, %v3942_v45, 0.0 }
 0xb29   : > { %2153 = vadd.xlane.f32.xlu1 %v2152_v46 }
 0xb7d   : > { %v2133_v47 = vpop.xlane.xlu1 %2132  ;;  %v2136_v48 = vpop.xlane.xlu0 %2135 }
 0xb7e   : > { %v2141_v16 = vsub.f32 %v2031_v30, %v2133_v47  ;;  %v2142_v49 = vsub.f32 %v2077_v31, %v2136_v48  ;;  %v3846_v31 = vld [vmem:[%s4898_s4 + $0x60] sm:$0xff]  }
 0xb80   : > { %v2146_v51 = vmul.f32 1.442695, %v2141_v16  ;;  %v2148_v52 = vmul.f32 1.442695, %v2142_v49 }
 0xb81   : > { %v1939_v54 = vpop.permute.xlu1 %1938 }
 0xb82   : > { %3943 = vpow2.f32 %v2146_v51  ;;  %v2226_v55 = vsel %vm875_vm2, %v1939_v54, 0  ;;  %v3851_v54 = vld [vmem:[%s4900_s6 + $0x1e0] ss:$16 sps:$4 sm:$0xff]  }
 0xb83   : > { %3945 = vpow2.f32 %v2148_v52  ;;  %3625 = vmatpush3.bf16.msra.mxu1 %v2226_v55  ;;  %v3853_v55 = vld [vmem:[%s4900_s6 + $0x1e4] ss:$16 sps:$4 sm:$0xff]  }
 0xb84   : > { %3636 = vmatprep.subr.bf16.mxu1 %v4027_v1 }
 0xb85   : > { %v2139_v56 = vpop.xlane.xlu0 %2138 }
 0xb86   : > { %v2143_v53 = vsub.f32 %v2123_v39, %v2139_v56  ;;  %v3854_v56 = vld [vmem:[%s4900_s6 + $0x1e8] ss:$16 sps:$4 sm:$0xff]  }
 0xb88   : > { %v2150_v7 = vmul.f32 1.442695, %v2143_v53  ;;  %v3856_v53 = vld [vmem:[%s4900_s6 + $0x1ec] ss:$16 sps:$4 sm:$0xff]  }
 0xb8a   : > { %3947 = vpow2.f32 %v2150_v7  ;;  %v3862_v7 = vld [vmem:[%s4900_s6 + $0x1cc] ss:$16 sps:$4 sm:$0xff]  }
 0xb8f   : > { %v3944_v57 = vpop.eup %3943 }
 0xb90   : > { %v3946_v59 = vpop.eup %3945  ;;  %v2155_v60 = vsel %vm823_vm3, %v3944_v57, 0.0 }
 0xb91   : > { %2156 = vadd.xlane.f32.xlu0 %v2155_v60  ;;  %v2158_v61 = vsel %vm823_vm3, %v3946_v59, 0.0 }
 0xb92   : > { %2159 = vadd.xlane.f32.xlu1 %v2158_v61 }
 0xb97   : > { %v3948_v62 = vpop.eup %3947 }
 0xb98   : > { %v2161_v63 = vsel %vm823_vm3, %v3948_v62, 0.0 }
 0xb99   : > { %2162 = vadd.xlane.f32.xlu0 %v2161_v63 }
 0xba3   : > { %1942 = vrot.lane.b32.xlu1 %v4615_v13, %s4913_s14 }
 0xbaf   : > { %1940 = vrot.lane.b32.xlu0 %v4615_v13, %s4031_s29 }
 0xbb2   : > { %v2154_v0 = vpop.xlane.xlu1 %2153 }
 0xbb3   : > { %3949 = vrcp.f32 %v2154_v0 }
 0xbc0   : > { %v3950_v3 = vpop.eup %3949 }
 0xbc1   : > { %v2168_v5 = vmul.f32 %v3950_v3, %v3942_v45 }
 0xbc3   : > { %v2172_v6 = vpack.c.bf16 %v2168_v5, %v2168_v5  ;;  %v3865_v5 = vld [vmem:[%s4900_s6 + $0x1a4] ss:$16 sps:$4 sm:$0xff]  }
 0xbc5   : > { %3621 = vmatmul.mubr.msk.bf16.vlgmr.msra.gmra.mxu0 %vm823_vm3, %v2172_v6  ;;  %v3868_v6 = vld [vmem:[%s4900_s6 + $0x1ac] ss:$16 sps:$4 sm:$0xff]  }
 0xbc6   : > { %3632 = vmatprep.mubr.msk.bf16.mxu0 %vm4029_vm0, %v4027_v1 }
 0xc1a   : > { %v2157_v8 = vpop.xlane.xlu0 %2156 }
 0xc1b   : > { %v2160_v9 = vpop.xlane.xlu1 %2159  ;;  %3951 = vrcp.f32 %v2157_v8  ;;  %v3866_v8 = vld [vmem:[%s4900_s6 + $0x1a8] ss:$16 sps:$4 sm:$0xff]  }
 0xc1c   : > { %3953 = vrcp.f32 %v2160_v9  ;;  %v3871_v9 = vld [vmem:[%s4900_s6 + $0x184] ss:$16 sps:$4 sm:$0xff]  }
 0xc1f   : > { %v1943_v17 = vpop.permute.xlu1 %1942 }
 0xc20   : > { %v2318_v21 = vsel %vm875_vm2, %v1943_v17, 0  ;;  %v3878_v17 = vld [vmem:[%s4900_s6 + $0x168] ss:$16 sps:$4 sm:$0xff]  }
 0xc22   : > { %v2163_v10 = vpop.xlane.xlu0 %2162 }
 0xc23   : > { %3955 = vrcp.f32 %v2163_v10  ;;  %v3874_v10 = vld [vmem:[%s4900_s6 + $0x18c] ss:$16 sps:$4 sm:$0xff]  }
 0xc26   : > { %v1941_v11 = vpop.permute.xlu0 %1940 }
 0xc27   : > { %v2272_v12 = vsel %vm875_vm2, %v1941_v11, 0  ;;  %v3869_v11 = vld [vmem:[%s4900_s6 + $0x180] ss:$16 sps:$4 sm:$0xff]  }
 0xc28   : > { %v3952_v13 = vpop.eup %3951  ;;  %3631 = vmatpush3.bf16.msra.mxu0 %v2272_v12  ;;  %v3872_v12 = vld [vmem:[%s4900_s6 + $0x188] ss:$16 sps:$4 sm:$0xff]  }
 0xc29   : > { %v3954_v14 = vpop.eup %3953  ;;  %v2169_v15 = vmul.f32 %v3952_v13, %v3944_v57  ;;  %3642 = vmatprep.subr.bf16.mxu0 %v4027_v1  ;;  %v3857_v57 = vld [vmem:[%s4900_s6 + $0x1c0] ss:$16 sps:$4 sm:$0xff]   ;;  %v3877_v13 = vld [vmem:[%s4900_s6 + $0x164] ss:$16 sps:$4 sm:$0xff]  }
 0xc2a   : > { %v2170_v18 = vmul.f32 %v3954_v14, %v3946_v59  ;;  %v3860_v59 = vld [vmem:[%s4900_s6 + $0x1c8] ss:$16 sps:$4 sm:$0xff]   ;;  %v3880_v14 = vld [vmem:[%s4900_s6 + $0x16c] ss:$16 sps:$4 sm:$0xff]  }
 0xc2b   : > { %v2173_v19 = vpack.c.bf16 %v2169_v15, %v2169_v15  ;;  %v3875_v15 = vld [vmem:[%s4900_s6 + $0x160] ss:$16 sps:$4 sm:$0xff]  }
 0xc2c   : > { %v2174_v20 = vpack.c.bf16 %v2170_v18, %v2170_v18  ;;  %v3883_v18 = vld [vmem:[%s4900_s6 + $0x144] ss:$16 sps:$4 sm:$0xff]  }
 0xc2d   : > { %3627 = vmatmul.mubr.msk.bf16.vlgmr.msra.gmra.mxu1 %vm823_vm3, %v2173_v19  ;;  %v3886_v19 = vld [vmem:[%s4900_s6 + $0x14c] ss:$16 sps:$4 sm:$0xff]  }
 0xc2e   : > { %3633 = vmatmul.mubr.msk.bf16.vlgmr.msra.gmra.mxu0 %vm823_vm3, %v2174_v20  ;;  %3637 = vmatpush3.bf16.msra.mxu1 %v2318_v21  ;;  %v3881_v20 = vld [vmem:[%s4900_s6 + $0x140] ss:$16 sps:$4 sm:$0xff]   ;;  %v3884_v21 = vld [vmem:[%s4900_s6 + $0x148] ss:$16 sps:$4 sm:$0xff]  }
 0xc2f   : > { %3638 = vmatprep.mubr.msk.bf16.mxu1 %vm4029_vm0, %v4027_v1  ;;  %3658 = vmatprep.mubr.msk.bf16.mxu0 %vm4029_vm0, %v4027_v1 }
 0xc30   : > { %v3956_v22 = vpop.eup %3955  ;;  %3643 = vmatpush3.bf16.msra.mxu0 %v3843_v26  ;;  %2692 = vmatprep.subr.bf16.mxu1 %v3853_v55  ;;  %v3890_v26 = vld [vmem:[%s4900_s6 + $0x128] ss:$16 sps:$4 sm:$0xff]  }
 0xc31   : > { %v2171_v23 = vmul.f32 %v3956_v22, %v3948_v62  ;;  %3644 = vmatprep.subr.bf16.mxu0 %v4027_v1  ;;  %v3889_v22 = vld [vmem:[%s4900_s6 + $0x124] ss:$16 sps:$4 sm:$0xff]  }
 0xc33   : > { %v2175_v25 = vpack.c.bf16 %v2171_v23, %v2171_v23  ;;  %v3892_v23 = vld [vmem:[%s4900_s6 + $0x12c] ss:$16 sps:$4 sm:$0xff]  }
 0xc34   : > { %3645 = vmatpush3.bf16.msra.mxu0 %v3844_v27  ;;  %v3895_v27 = vld [vmem:[%s4900_s6 + $0x104] ss:$16 sps:$4 sm:$0xff]  }
 0xc35   : > { %3639 = vmatmul.mubr.msk.bf16.vlgmr.msra.gmra.mxu1 %vm823_vm3, %v2175_v25  ;;  %3646 = vmatprep.subr.bf16.mxu0 %v4027_v1  ;;  %v3887_v25 = vld [vmem:[%s4900_s6 + $0x120] ss:$16 sps:$4 sm:$0xff]  }
 0xc36   : > { %2724 = vmatprep.mubr.bf16.mxu1 %v4028_v24  ;;  %2693 = vmatpush1.bf16.msra.mxu1 %v3851_v54 }
 0xc38   : > { %3647 = vmatpush3.bf16.msra.mxu0 %v3845_v29  ;;  %v3898_v29 = vld [vmem:[%s4900_s6 + $0x10c] ss:$16 sps:$4 sm:$0xff]  }
 0xc39   : > { %3648 = vmatprep.subr.bf16.mxu0 %v4027_v1 }
 0xc3c   : > { %3649 = vmatpush3.bf16.msra.mxu0 %v3846_v31  ;;  %v3896_v31 = vld [vmem:[%s4900_s6 + $0x108] ss:$16 sps:$4 sm:$0xff]  }
 0xc3d   : > { %3650 = vmatprep.subr.bf16.mxu0 %v4027_v1 }
 0xc40   : > { %3651 = vmatpush3.bf16.msra.mxu0 %v3847_v50 }
 0xc41   : > { %3652 = vmatprep.subr.bf16.mxu0 %v4027_v1 }
 0xc44   : > { %3653 = vmatpush3.bf16.msra.mxu0 %v3848_v58  ;;  %v3256_v58 = vld [vmem:[%s4899_s5 + $0x1] ss:$0 sm:$0xff] }
 0xc45   : > { %3654 = vmatprep.subr.bf16.mxu0 %v4027_v1 }
 0xc48   : > { %3655 = vmatpush3.bf16.msra.mxu0 %v3849_v35 }
 0xc49   : > { %3656 = vmatprep.subr.bf16.mxu0 %v4027_v1 }
 0xc4c   : > { %3657 = vmatpush3.bf16.msra.mxu0 %v3850_v36 }
 0xc4d   : > { %2733 = vmatprep.subr.bf16.mxu0 %v3856_v53 }
 0xc85   : > { %v2216_v30 = vpop.f32.mrf.mxu0 }
 0xc87   : > { %v3622_v32 = vpop.f32.mrf.mxu0 }
 0xc89   : > { %v2219_v33 = vpop.f32.mrf.mxu0 }
 0xc8b   : > { %v3623_v34 = vpop.f32.mrf.mxu0 }
 0xced   : > { %v2262_v37 = vpop.f32.mrf.mxu1 }
 0xcee   : > { %v2308_v38 = vpop.f32.mrf.mxu0  ;;  %2361 = vrot.lane.b32.xlu1 %v2262_v37, %s4913_s14 }
 0xcef   : > { %2365 = vrot.lane.b32.xlu0 %v2308_v38, %s4031_s29  ;;  %v3628_v39 = vpop.f32.mrf.mxu1  ;;  %v3899_v38 = vld [vmem:[%s4901_s7 + $0xf8] sm:$0xff]  }
 0xcf0   : > { %v3634_v40 = vpop.f32.mrf.mxu0  ;;  %v3900_v39 = vld [vmem:[%s4901_s7 + $0xb8] sm:$0xff]  }
 0xcf1   : > { %v2265_v2 = vpop.f32.mrf.mxu1  ;;  %v3901_v40 = vld [vmem:[%s4901_s7 + $0xf0] sm:$0xff]  }
 0xcf2   : > { %v2311_v41 = vpop.f32.mrf.mxu0  ;;  %v3902_v2 = vld [vmem:[%s4901_s7 + $0xb0] sm:$0xff]  }
 0xcf3   : > { %v3629_v4 = vpop.f32.mrf.mxu1  ;;  %v3903_v41 = vld [vmem:[%s4901_s7 + $0xe8] sm:$0xff]  }
 0xcf4   : > { %v3635_v42 = vpop.f32.mrf.mxu0  ;;  %v3904_v4 = vld [vmem:[%s4901_s7 + $0xa8] sm:$0xff]  }
 0xcf5   : > { %v2354_v43 = vpop.f32.mrf.mxu1  ;;  %v3905_v42 = vld [vmem:[%s4901_s7 + $0xe0] sm:$0xff]  }
 0xcf6   : > { %2369 = vrot.lane.b32.xlu1 %v2354_v43, %s4912_s28  ;;  %v3906_v43 = vld [vmem:[%s4901_s7 + $0xa0] sm:$0xff]   ;;  %s337_s28 = sand.u32 1, %s4017_s10  }
 0xcf7   : > { %v3640_v1 = vpop.f32.mrf.mxu1  ;;  %s3071_s26 = sshll.u32 %s337_s28, 3  ;;  %s2983_s29 = scalar_lea.sflag [#allocation3], %s337_s28 }
 0xcf8   : > { %v3907_v1 = vld [vmem:[%s4901_s7 + $0xd8] sm:$0xff]   ;;  %s339_s17 = scalar_lea.vmem [#allocation2], %s3071_s26 }
 0xcf9   : > { %v2357_v44 = vpop.f32.mrf.mxu1  ;;  %s2996_s21 = sshll.u32 %s339_s17, 4  ;;  %s2997_s21 = int_to_ptr.vmem [resolvable:$true] %s2996_s21 }
 0xcfa   : > { %v3908_v44 = vld [vmem:[%s4901_s7 + $0x98] sm:$0xff]   ;;  %s3965_s14 = scalar_lea.vmem %s2997_s21, 128  ;;  %p3972_p1 = scmp.lt.s32.totalorder %s2997_s21, %s3970_s25 }
 0xcfb   : > { %v3641_v45 = vpop.f32.mrf.mxu1  ;;  %p3966_p12 = scmp.ne.s32.totalorder %s2997_s21, %s3965_s14  ;;  %p3973_p2 = scmp.lt.s32.totalorder %s3971_s13, %s3965_s14 }
 0xcfc   : > { %v3909_v45 = vld [vmem:[%s4901_s7 + $0xd0] sm:$0xff]  }
 0xcfd   : > { %p3967_p13 = pnand %p3966_p12, %p4122_p5  ;;  %p3974_p3 = por %p3973_p2, %p3972_p1 }
 0xcff   : > { %p3968_p0 = pneg %p3967_p13 }
 0xd01   : > { %p3975_p4 = pnand %p3974_p3, %p3968_p0 }
 0xd60   : > { %v2362_v46 = vpop.permute.xlu1 %2361 }
 0xd61   : > { %v2372_v47 = vsel %vm638_vm1, %v2216_v30, %v2362_v46  ;;  %v2366_v48 = vpop.permute.xlu0 %2365  ;;  %v3893_v30 = vld [vmem:[%s4900_s6 + $0x100] ss:$16 sps:$4 sm:$0xff]  }
 0xd62   : > { %v2373_v16 = vsel %vm1070_vm4, %v2372_v47, %v2366_v48  ;;  %v3910_v46 = vld [vmem:[%s4901_s7 + $0x90] sm:$0xff]   ;;  %v3911_v47 = vld [vmem:[%s4901_s7 + $0xc8] sm:$0xff]  }
 0xd63   : > { %v3912_v48 = vld [vmem:[%s4901_s7 + $0x88] sm:$0xff]  }
 0xd68   : > { %v2370_v49 = vpop.permute.xlu1 %2369 }
 0xd69   : > { %v2374_v51 = vsel %vm1072_vm5, %v2373_v16, %v2370_v49  ;;  %v3913_v16 = vld [vmem:[%s4901_s7 + $0xc0] sm:$0xff]  }
 0xd6a   : > { %v2375_v52 = vpack.c.bf16 %v2374_v51, %v2374_v51  ;;  %v3914_v49 = vld [vmem:[%s4901_s7 + $0x80] sm:$0xff]  }
 0xd6c   : > { %3659 = vmatmul.mubr.bf16.vlgmr.msra.gmra.mxu0 %v2375_v52 }
 0xd6d   : > { %2765 = vmatprep.mubr.bf16.mxu0 %v4028_v24  ;;  %v3859_v24 = vld [vmem:[%s4900_s6 + $0x1c4] ss:$16 sps:$4 sm:$0xff]   ;;  %2734 = vmatpush1.bf16.msra.mxu0 %v3854_v56 }
 0xd6e   : > { %2694 = vmatprep.subr.bf16.mxu1 %v3859_v24  ;;  %2735 = vmatprep.subr.bf16.mxu0 %v3862_v7 }
 0xd6f   : > { %2695 = vmatpush1.bf16.msra.mxu1 %v3857_v57 }
 0xd70   : > { %2696 = vmatprep.subr.bf16.mxu1 %v3865_v5 }
 0xd71   : > { %2736 = vmatpush1.bf16.msra.mxu0 %v3860_v59 }
 0xd72   : > { %2737 = vmatprep.subr.bf16.mxu0 %v3868_v6 }
 0xd75   : > { %2738 = vmatpush1.bf16.msra.mxu0 %v3866_v8 }
 0xd76   : > { %2739 = vmatprep.subr.bf16.mxu0 %v3874_v10 }
 0xd79   : > { %2740 = vmatpush1.bf16.msra.mxu0 %v3872_v12 }
 0xd7a   : > { %2741 = vmatprep.subr.bf16.mxu0 %v3880_v14 }
 0xd7d   : > { %2742 = vmatpush1.bf16.msra.mxu0 %v3878_v17 }
 0xd7e   : > { %2743 = vmatprep.subr.bf16.mxu0 %v3886_v19 }
 0xd81   : > { %2744 = vmatpush1.bf16.msra.mxu0 %v3884_v21 }
 0xd82   : > { %2745 = vmatprep.subr.bf16.mxu0 %v3892_v23 }
 0xd85   : > { %2746 = vmatpush1.bf16.msra.mxu0 %v3890_v26 }
 0xd86   : > { %2747 = vmatprep.subr.bf16.mxu0 %v3898_v29 }
 0xd89   : > { %2748 = vmatpush1.bf16.msra.mxu0 %v3896_v31 }
 0xe2c   : > { %v2475_v60 = vpop.f32.mrf.mxu0 }
 0xe2d   : > { %v4728_v61 = vadd.f32 %v2475_v60, %v4527_v28  ;;  %v3863_v28 = vld [vmem:[%s4900_s6 + $0x1a0] ss:$16 sps:$4 sm:$0xff]  }
 0xe2e   : > { %v3660_v62 = vpop.f32.mrf.mxu0  ;;  %2697 = vmatpush1.bf16.msra.mxu1 %v3863_v28 }
 0xe2f   : > { %v2482_v63 = vmul.f32 %v4728_v61, %v4728_v61  ;;  %2698 = vmatprep.subr.bf16.mxu1 %v3871_v9 }
 0xe30   : > { %v2478_v0 = vpop.f32.mrf.mxu0 }
 0xe31   : > { %2483 = vadd.xlane.f32.xlu0 %v2482_v63 }
 0xe32   : > { %v3661_v3 = vpop.f32.mrf.mxu0  ;;  %2699 = vmatpush1.bf16.msra.mxu1 %v3869_v11 }
 0xe33   : > { %2700 = vmatprep.subr.bf16.mxu1 %v3877_v13 }
 0xe36   : > { %2701 = vmatpush1.bf16.msra.mxu1 %v3875_v15 }
 0xe37   : > { %2702 = vmatprep.subr.bf16.mxu1 %v3883_v18 }
 0xe3a   : > { %2703 = vmatpush1.bf16.msra.mxu1 %v3881_v20 }
 0xe3b   : > { %2704 = vmatprep.subr.bf16.mxu1 %v3889_v22 }
 0xe3e   : > { %2705 = vmatpush1.bf16.msra.mxu1 %v3887_v25 }
 0xe3f   : > { %2706 = vmatprep.subr.bf16.mxu1 %v3895_v27 }
 0xe42   : > { %2707 = vmatpush1.bf16.msra.mxu1 %v3893_v30 }
 0xe43   : > { %3464 = vmatprep.subr.bf16.mxu1 %v3899_v38 }
 0xeba   : > { %v2484_v32 = vpop.xlane.xlu0 %2483 }
 0xebb   : > { %v2485_v33 = vmul.f32 0.0078125, %v2484_v32 }
 0xebd   : > { %v2486_v50 = vadd.f32 1e-06, %v2485_v33 }
 0xebf   : > { %3957 = vrsqrt.f32 %v2486_v50  ;;  %v3369_v50 = vld [vmem:[%s4902_s8] ss:$0 sm:$0xff] }
 0xecc   : > { %v3958_v34 = vpop.eup %3957 }
 0xecd   : > { %v2488_v35 = vmul.f32 %v3958_v34, %v4728_v61 }
 0xecf   : > { %v2497_v36 = vmul.f32 %v3256_v58, %v2488_v35 }
 0xed1   : > { %v2498_v37 = vpack.c.bf16 %v2497_v36, %v2497_v36 }
 0xed3   : > { %2725 = vmatmul.mubr.bf16.vlgmr.msra.gmra.mxu1 %v2498_v37  ;;  %2766 = vmatmul.mubr.bf16.vlgmr.msra.gmra.mxu0 %v2498_v37 }
 0xed4   : > { %3465 = vmatpush3.bf16.msra.mxu1 %v3900_v39 }
 0xed5   : > { %3466 = vmatprep.subr.bf16.mxu1 %v3901_v40 }
 0xed8   : > { %3467 = vmatpush3.bf16.msra.mxu1 %v3902_v2 }
 0xed9   : > { %3468 = vmatprep.subr.bf16.mxu1 %v3903_v41 }
 0xedc   : > { %3469 = vmatpush3.bf16.msra.mxu1 %v3904_v4 }
 0xedd   : > { %3470 = vmatprep.subr.bf16.mxu1 %v3905_v42 }
 0xee0   : > { %3471 = vmatpush3.bf16.msra.mxu1 %v3906_v43 }
 0xee1   : > { %3472 = vmatprep.subr.bf16.mxu1 %v3907_v1 }
 0xee4   : > { %3473 = vmatpush3.bf16.msra.mxu1 %v3908_v44 }
 0xee5   : > { %3474 = vmatprep.subr.bf16.mxu1 %v3909_v45 }
 0xee8   : > { %3475 = vmatpush3.bf16.msra.mxu1 %v3910_v46 }
 0xee9   : > { %3476 = vmatprep.subr.bf16.mxu1 %v3911_v47 }
 0xeec   : > { %3477 = vmatpush3.bf16.msra.mxu1 %v3912_v48 }
 0xeed   : > { %3478 = vmatprep.subr.bf16.mxu1 %v3913_v16 }
 0xef0   : > { %3479 = vmatpush3.bf16.msra.mxu1 %v3914_v49 }
 0xf93   : > { %v2726_v51 = vpop.f32.mrf.mxu1  ;;  %v2767_v52 = vpop.f32.mrf.mxu0 }
 0xf94   : > { %v2776_v54 = vmul.f32 0.044715, %v2726_v51  ;;  %v2774_v9 = vmul.f32 0.5, %v2726_v51 }
 0xf95   : > { %v2728_v55 = vpop.f32.mrf.mxu1  ;;  %v2769_v56 = vpop.f32.mrf.mxu0 }
 0xf96   : > { %v2778_v53 = vmul.f32 %v2776_v54, %v2726_v51  ;;  %v2777_v24 = vmul.f32 0.044715, %v2728_v55  ;;  %v2775_v13 = vmul.f32 0.5, %v2728_v55 }
 0xf97   : > { %v2730_v7 = vpop.f32.mrf.mxu1  ;;  %v2771_v57 = vpop.f32.mrf.mxu0 }
 0xf98   : > { %v2780_v59 = vmul.f32 %v2778_v53, %v2726_v51  ;;  %v2779_v60 = vmul.f32 %v2777_v24, %v2728_v55 }
 0xf99   : > { %v2731_v62 = vpop.f32.mrf.mxu1  ;;  %v2772_v63 = vpop.f32.mrf.mxu0 }
 0xf9a   : > { %v2782_v0 = vadd.f32 %v2780_v59, %v2726_v51  ;;  %v2781_v3 = vmul.f32 %v2779_v60, %v2728_v55 }
 0xf9c   : > { %v2784_v5 = vmul.f32 0.7978846, %v2782_v0  ;;  %v2783_v6 = vadd.f32 %v2781_v3, %v2728_v55 }
 0xf9e   : > { %3959 = vtanh.f32 %v2784_v5  ;;  %v2785_v28 = vmul.f32 0.7978846, %v2783_v6 }
 0xfa0   : > { %3961 = vtanh.f32 %v2785_v28 }
 0xfab   : > { %v3960_v8 = vpop.eup %3959 }
 0xfac   : > { %v2788_v10 = vadd.f32 1.0, %v3960_v8 }
 0xfad   : > { %v3962_v11 = vpop.eup %3961 }
 0xfae   : > { %v2790_v12 = vmul.f32 %v2788_v10, %v2774_v9  ;;  %v2789_v14 = vadd.f32 1.0, %v3962_v11 }
 0xfb0   : > { %v2791_v15 = vmul.f32 %v2789_v14, %v2775_v13  ;;  %v2792_v17 = vmul.f32 %v2790_v12, %v2767_v52 }
 0xfb2   : > { %v2793_v18 = vmul.f32 %v2791_v15, %v2769_v56  ;;  %v2794_v20 = vpack.c.bf16 %v2792_v17, %v2792_v17 }
 0xfb4   : > { %v2795_v19 = vpack.c.bf16 %v2793_v18, %v2793_v18 }
 0xfb6   : > { %2957 = vmatprep.mubr.bf16.mxu1 %v2795_v19 }
 0xfb7   : > { %2958 = vmatmul.mubr.bf16.vlgmr.msra.gmra.mxu1 %v2794_v20 }
0x1077   : > { %v3480_v21 = vpop.f32.mrf.mxu1 }
0x1079   : > { %v3481_v22 = vpop.f32.mrf.mxu1 }
0x107a   : > { %v3482_v23 = vadd.f32 %v3481_v22, %v3480_v21 }
0x107b   : > { %v3483_v25 = vpop.f32.mrf.mxu1 }
0x107c   : > { %v2965_v26 = vadd.f32 %v3482_v23, %v4728_v61 }
0x107d   : > { %v3484_v27 = vpop.f32.mrf.mxu1 }
0x107e   : > { %v2966_v29 = vmul.f32 %v2965_v26, %v2965_v26 }
0x1080   : > { %2967 = vadd.xlane.f32.xlu1 %v2966_v29 }
0x1109   : > { %v2968_v30 = vpop.xlane.xlu1 %2967 }
0x110a   : > { %v2969_v31 = vmul.f32 0.0078125, %v2968_v30 }
0x110c   : > { %v2970_v32 = vadd.f32 1e-06, %v2969_v31 }
0x110e   : > { %3963 = vrsqrt.f32 %v2970_v32 }
0x111b   : > { %v3964_v33 = vpop.eup %3963 }
0x111c   : > { %v2972_v34 = vmul.f32 %v3964_v33, %v2965_v26 }
0x111e   : > { %v2980_v61 = vmul.f32 %v3369_v50, %v2972_v34 }
0x1120   : > { %2981 = vst [vmem:[%s339_s17] sm:$0xff] %v2980_v61 }
0x1121   : > { %3978 = shalt.err (!%p3975_p4)
}
0x1122   : > { %s3979_s26 = scalar_lea.hbm %s2994_s24, 128  ;;  %s3983_s16 = scalar_lea.hbm %s4903_s9, 256 }
0x1123   : > { %p3980_p7 = scmp.ne.s32.totalorder %s2994_s24, %s3979_s26  ;;  %p3984_p10 = scmp.lt.s32.totalorder %s2994_s24, %s4903_s9 }
0x1124   : > { %p3985_p11 = scmp.lt.s32.totalorder %s3983_s16, %s3979_s26 }
0x1125   : > { %p3981_p8 = pnand %p3980_p7, %p4122_p5 }
0x1126   : > { %p3986_p12 = por %p3985_p11, %p3984_p10 }
0x1127   : > { %p3982_p9 = pneg %p3981_p8 }
0x1129   : > { %p3987_p13 = pnand %p3986_p12, %p3982_p9 }
0x112b   : > { %3990 = shalt.err (!%p3987_p13)
}
0x112c   : > { %3662 = dma.vmem_to_hbm [thread:$0]  (%p4122_p5), %s2997_s21, 128, %s2994_s24, %s2983_s29  }
0x112d PF: > { %p3668_p0 = scmp.ge.s32.totalorder %s4025_s12, 2  ;;  %s3008_s0 = sand.u32 1, %s4013_s30  }
0x112e   : > { %s3009_s23 = scalar_lea.sflag [#allocation3], %s3008_s0 }
0x112f   : > { %p3665_p1 = pnand %p3668_p0, %p4126_p6 }
0x1131   : > { %p3666_p2 = pneg %p3665_p1 }
0x1133   : > { %4008 = dma.done.wait (%p3666_p2), %s3009_s23, 128  }
0x1134   : > { %4010 = vsyncadd (%p3666_p2), %s3009_s23, 4294967168  ;;  %p19_p3 = scmp.ge.s32.totalorder %s4109_s15, 4   ;;  %s4914_s30 = smov %s4017_s10 }
0x1135   : > { %s4915_s10 = smov %s4021_s11  ;;  %s4916_s11 = smov %s4120_s18 }
0x1136   : > { %s4917_s12 = smov %s4109_s15  ;;  %21 = sbr.rel (!%p19_p3) target bundleno = 5 (0x5), region = 100 }
0x113b   :  { %3014 = vsyncpa [#allocation3], 1 }
0x113c   :  { %3016 = vsyncpa [#allocation3 + $0x1], 1 }

</bundles_post_ra>
